<compile_context>
chip_gen: v7x
topology: tpu7x:2x2x1
jax: 0.10.0
libtpu: 0.0.40
codegen_flags: <defaults>
</compile_context>

<pallas_src>
import jax
import jax.numpy as jnp
from jax.experimental import pallas as pl
from jax.experimental.pallas import tpu as pltpu


# ----------------------------------------------------------------------------
# Fused kernel: all four stages, grid=(), fully VMEM resident.
# ----------------------------------------------------------------------------
def _down_block_kernel(alpha_ref,          # (4,) f32 SMEM : PReLU slopes (4 stages)
                       x_ref,              # (M2, 16*Cin) bf16 : input, blocked layout
                       w1_ref,             # (16*Cin, CB) bf16 : 1x1 conv (phase block-diag)
                       b1_ref,             # (1, CB)     f32   : 1x1 conv bias (blocked)
                       w2_ref,             # (9, CB, nf) bf16  : down_conv1 per-tap weights
                       w3_ref,             # (9, nf, CB) bf16  : down_conv2 (polyphase) per tap
                       w4_ref,             # (9, CB, nf) bf16  : down_conv3 per-tap weights
                       o_ref,              # (M2, nf)    f32   : l1 + l0
                       padx_ref,           # (Nb, Ho+2, Wo+2, CB) f32 scratch (x0, padded)
                       padl_ref,           # (Nb, Ho+2, Wo+2, nf) f32 scratch (l0, padded)
                       padd_ref):          # (Nb, Ho+2, Wo+2, CB) f32 scratch (h0-x0, padded)
    f32, bf16 = jnp.float32, jnp.bfloat16
    Nb, Hp, Wp, CB = padx_ref.shape
    Ho, Wo = Hp - 2, Wp - 2
    M2, nf = o_ref.shape

    def prelu(v, a):
        return jnp.where(v >= 0.0, v, a * v)

    def store_padded(pad_ref, val_2d):
        """Zero-pad border + write interior of a blocked low-res map."""
        pad_ref[...] = jnp.zeros(pad_ref.shape, pad_ref.dtype)
        pad_ref[:, 1:Ho + 1, 1:Wo + 1, :] = val_2d.reshape(
            Nb, Ho, Wo, pad_ref.shape[-1])

    def conv3x3(pad_ref, w_ref, n_out):
        """3x3 s1 p1 conv over the (Nb, Ho, Wo) grid; per-tap MXU matmuls,
        f32 accumulation.  bf16 cast of the tap matches the reference
        numerics (conv inputs are bf16 there too)."""
        c_in = pad_ref.shape[-1]
        acc = jnp.zeros((M2, n_out), f32)
        for t in range(9):
            i, j = divmod(t, 3)
            tap = pad_ref[:, i:i + Ho, j:j + Wo, :]            # (Nb, Ho, Wo, C)
            tap = tap.reshape(M2, c_in).astype(bf16)
            acc = acc + jnp.dot(tap, w_ref[t], preferred_element_type=f32)
        return acc

    # -- stage 1: 1x1 conv (+bias) + PReLU; output in blocked (c,ry,rx) layout
    x0 = jnp.dot(x_ref[...], w1_ref[...], preferred_element_type=f32)
    x0 = prelu(x0 + b1_ref[...], alpha_ref[0])                 # (M2, CB) f32
    store_padded(padx_ref, x0)

    # -- stage 2: down_conv1 (Conv 8x8 s4 p2) == 3x3 conv on the blocked grid
    l0 = prelu(conv3x3(padx_ref, w2_ref, nf), alpha_ref[1])    # (M2, nf) f32
    store_padded(padl_ref, l0)

    # -- stage 3: down_conv2 (ConvTranspose 8x8 s4 p2) == 3x3 conv, polyphase
    #    output; fused residual d = h0 - x0 (kept f32, sign specialised)
    h0 = prelu(conv3x3(padl_ref, w3_ref, CB), alpha_ref[2])    # (M2, CB) f32
    store_padded(padd_ref, h0 - x0)

    # -- stage 4: down_conv3 (Conv 8x8 s4 p2) on (h0 - x0); fused "+ l0"
    l1 = prelu(conv3x3(padd_ref, w4_ref, nf), alpha_ref[3])    # (M2, nf) f32
    o_ref[...] = (l1 + l0).astype(o_ref.dtype)


# ----------------------------------------------------------------------------
# Trace-time (XLA) weight packing for the blocked / polyphase formulation
# ----------------------------------------------------------------------------
def _pack_strided_conv(w_oihw, s):
    """Conv2d(k=2s, stride=s, pad=s//2) -> per-tap weights of an equivalent
    3x3 s1 p1 conv over the s*s-blocked grid.  Returns (9, Cin*s*s, Cout);
    row order (ci, ry, rx); structurally unused taps get exact zeros."""
    Cout, Cin, K, _ = w_oihw.shape
    assert K == 2 * s
    i = jnp.arange(3)
    r = jnp.arange(s)
    k_idx = s * (i[:, None] - 1) + r[None, :] + s // 2            # (3, s)
    valid = (k_idx >= 0) & (k_idx < K)
    kc = jnp.clip(k_idx, 0, K - 1)
    wg = w_oihw[:, :, kc[:, :, None, None], kc[None, None, :, :]]  # (Co,Ci,3,s,3,s)
    mask = (valid[:, :, None, None] & valid[None, None, :, :]).astype(w_oihw.dtype)
    wg = wg * mask
    wg = jnp.transpose(wg, (2, 4, 1, 3, 5, 0))                     # (3,3,Ci,s,s,Co)
    return wg.reshape(9, Cin * s * s, Cout)


def _pack_deconv(w_iohw, s):
    """ConvTranspose2d(k=2s, stride=s, pad=s//2) -> per-tap weights of a
    3x3 s1 p1 conv on the low-res grid with polyphase (blocked) output.
    Returns (9, Cin, Cout*s*s); column order (co, ry, rx)."""
    Cin, Cout, K, _ = w_iohw.shape
    assert K == 2 * s
    i = jnp.arange(3)
    r = jnp.arange(s)
    k_idx = r[None, :] - s * (i[:, None] - 1) + s // 2             # (3, s)
    valid = (k_idx >= 0) & (k_idx < K)
    kc = jnp.clip(k_idx, 0, K - 1)
    wg = w_iohw[:, :, kc[:, :, None, None], kc[None, None, :, :]]  # (Ci,Co,3,s,3,s)
    mask = (valid[:, :, None, None] & valid[None, None, :, :]).astype(w_iohw.dtype)
    wg = wg * mask
    wg = jnp.transpose(wg, (2, 4, 0, 1, 3, 5))                     # (3,3,Ci,Co,s,s)
    return wg.reshape(9, Cin, Cout * s * s)


# ----------------------------------------------------------------------------
# DownBlock forward (Pallas path)
# ----------------------------------------------------------------------------
def down_block_forward(params, x_nchw):
    p = params
    bf16 = jnp.bfloat16
    nf = p['conv_w'].shape[0]
    Nb, Cin, H, W = x_nchw.shape
    s = 4                                    # stride of the 8x8 (de)convs
    assert H % s == 0 and W % s == 0
    Ho, Wo = H // s, W // s
    P = s * s                                # 16 sub-pixel phases per block
    CB = nf * P                              # blocked channel count (128 here)
    M2 = Nb * Ho * Wo

    # --- trace-time packing (tiny) ------------------------------------------
    # stage 1: block-diagonal-over-phase weight so the 1x1 conv is one
    # lane-dense (M2, P*Cin) @ (P*Cin, CB) matmul in blocked layout.
    w1 = p['conv_w'][:, :, 0, 0]                                   # (nf, Cin)
    eye = jnp.eye(P, dtype=jnp.float32)
    w1_big = jnp.einsum('pq,ck->pkcq', eye, w1).reshape(P * Cin, CB)
    b1_blk = jnp.repeat(p['conv_b'], P).reshape(1, CB)             # (c, phase) order

    w2 = _pack_strided_conv(p['dc1_w'], s)                         # (9, CB, nf)
    w3 = _pack_deconv(p['dc2_w'], s)                               # (9, nf, CB)
    w4 = _pack_strided_conv(p['dc3_w'], s)                         # (9, CB, nf)
    alphas = jnp.concatenate([p['conv_a'], p['dc1_a'],
                              p['dc2_a'], p['dc3_a']]).astype(jnp.float32)

    # input -> blocked layout: rows (n, oy, ox), cols (ry, rx, ci)
    x_nhwc = jnp.transpose(x_nchw, (0, 2, 3, 1))
    x_blk = jnp.transpose(x_nhwc.reshape(Nb, Ho, s, Wo, s, Cin),
                          (0, 1, 3, 2, 4, 5)).reshape(M2, P * Cin)

    vmem = pl.BlockSpec(memory_space=pltpu.MemorySpace.VMEM)
    smem = pl.BlockSpec(memory_space=pltpu.MemorySpace.SMEM)

    out = pl.pallas_call(
        _down_block_kernel,
        out_shape=jax.ShapeDtypeStruct((M2, nf), jnp.float32),
        in_specs=[smem, vmem, vmem, vmem, vmem, vmem, vmem],
        out_specs=vmem,
        scratch_shapes=[
            pltpu.VMEM((Nb, Ho + 2, Wo + 2, CB), jnp.float32),
            pltpu.VMEM((Nb, Ho + 2, Wo + 2, nf), jnp.float32),
            pltpu.VMEM((Nb, Ho + 2, Wo + 2, CB), jnp.float32),
        ],
    )(alphas, x_blk.astype(bf16), w1_big.astype(bf16), b1_blk,
      w2.astype(bf16), w3.astype(bf16), w4.astype(bf16))

    # (M2, nf) -> NCHW
    return jnp.transpose(out.reshape(Nb, Ho, Wo, nf), (0, 3, 1, 2))


# ----------------------------------------------------------------------------
# Deterministic parameter init (shapes from the PyTorch module __init__)
# ----------------------------------------------------------------------------
def init_params(key, num_filter, num_stages=1, kernel_size=8):
    ks = jax.random.split(key, 5)

    def kaiming(k, shape, fan_in, a=0.01):
        gain = (2.0 / (1.0 + a * a)) ** 0.5
        return gain / (fan_in ** 0.5) * jax.random.normal(k, shape, jnp.float32)

    nf = num_filter
    return {
        # conv: 1x1, bias=True, PReLU(0.01).  (PyTorch zero-inits the bias;
        # random here so the test actually exercises the bias path.)
        'conv_w': kaiming(ks[0], (nf, nf * num_stages, 1, 1), nf * num_stages),
        'conv_b': 0.1 * jax.random.normal(ks[4], (nf,), jnp.float32),
        'conv_a': jnp.full((1,), 0.01, jnp.float32),
        # down_conv1: Conv2d(nf, nf, 8, 4, 2), no bias
        'dc1_w': kaiming(ks[1], (nf, nf, kernel_size, kernel_size),
                         nf * kernel_size ** 2),
        'dc1_a': jnp.full((1,), 0.01, jnp.float32),
        # down_conv2: ConvTranspose2d(nf, nf, 8, 4, 2), weight layout (in,out,kh,kw)
        'dc2_w': kaiming(ks[2], (nf, nf, kernel_size, kernel_size),
                         nf * kernel_size ** 2),
        'dc2_a': jnp.full((1,), 0.01, jnp.float32),
        # down_conv3: Conv2d(nf, nf, 8, 4, 2), no bias
        'dc3_w': kaiming(ks[3], (nf, nf, kernel_size, kernel_size),
                         nf * kernel_size ** 2),
        'dc3_a': jnp.full((1,), 0.01, jnp.float32),
    }


# ----------------------------------------------------------------------------
# Pure-JAX reference (XLA convs) with the same bf16-operand / f32-acc numerics
# ----------------------------------------------------------------------------
def _ref_conv(x, w_oihw, b, alpha, stride, pad, lhs_dilation=1):
    w_hwio = jnp.transpose(w_oihw, (2, 3, 1, 0)).astype(jnp.bfloat16)
    y = jax.lax.conv_general_dilated(
        x.astype(jnp.bfloat16), w_hwio, window_strides=(stride, stride),
        padding=((pad, pad), (pad, pad)),
        lhs_dilation=(lhs_dilation, lhs_dilation),
        dimension_numbers=('NHWC', 'HWIO', 'NHWC'),
        preferred_element_type=jnp.float32)
    if b is not None:
        y = y + b
    return jnp.where(y >= 0, y, alpha * y)


def ref_forward(params, x_nchw):
    p = params
    x = jnp.transpose(x_nchw, (0, 2, 3, 1))
    x0 = _ref_conv(x, p['conv_w'], p['conv_b'], p['conv_a'][0], 1, 0)
    l0 = _ref_conv(x0, p['dc1_w'], None, p['dc1_a'][0], 4, 2)
    kh = p['dc2_w'].shape[2]
    w_eq = jnp.transpose(p['dc2_w'][:, :, ::-1, ::-1], (1, 0, 2, 3))  # OIHW
    h0 = _ref_conv(l0, w_eq, None, p['dc2_a'][0], 1, kh - 1 - 2, lhs_dilation=4)
    l1 = _ref_conv(h0 - x0, p['dc3_w'], None, p['dc3_a'][0], 4, 2)
    return jnp.transpose(l1 + l0, (0, 3, 1, 2))


if __name__ == "__main__":
    key = jax.random.PRNGKey(0)
    kx, kp = jax.random.split(key)
    num_filter, num_stages = 8, 1
    x = jax.random.normal(kx, (2, num_filter * num_stages, 16, 16), jnp.float32)
    params = init_params(kp, num_filter, num_stages)

    fwd = jax.jit(down_block_forward)
    out = jax.block_until_ready(fwd(params, x))
    ref = jax.block_until_ready(ref_forward(params, x))

    assert out.shape == (2, num_filter, 4, 4), out.shape
    # bf16 MXU operands in both paths -> only f32 summation-order / bf16
    # re-rounding differences; structural bugs would be O(1) off.
    assert bool(jnp.allclose(out, ref, atol=1e-2, rtol=1e-2)), \
        float(jnp.max(jnp.abs(out - ref)))
    print("KERNEL_OK")
</pallas_src>

<mosaic_0001>
module attributes {stable_mosaic.version = 11 : i64} {
  func.func @_down_block_kernel(%arg0: memref<4xf32, #tpu.memory_space<smem>>, %arg1: memref<32x128xbf16, #tpu.memory_space<vmem>>, %arg2: memref<128x128xbf16, #tpu.memory_space<vmem>>, %arg3: memref<1x128xf32, #tpu.memory_space<vmem>>, %arg4: memref<9x128x8xbf16, #tpu.memory_space<vmem>>, %arg5: memref<9x8x128xbf16, #tpu.memory_space<vmem>>, %arg6: memref<9x128x8xbf16, #tpu.memory_space<vmem>>, %arg7: memref<32x8xf32, #tpu.memory_space<vmem>>, %arg8: memref<2x6x6x128xf32, #tpu.memory_space<vmem>>, %arg9: memref<2x6x6x8xf32, #tpu.memory_space<vmem>>, %arg10: memref<2x6x6x128xf32, #tpu.memory_space<vmem>>) attributes {dimension_semantics = [], scalar_prefetch = 0 : i64, scratch_operands = 3 : i64, tpu.core_type = #tpu.core_type<tc>} {
    %c0 = arith.constant 0 : index
    %c0_0 = arith.constant 0 : index
    %0 = vector.load %arg1[%c0, %c0_0] : memref<32x128xbf16, #tpu.memory_space<vmem>>, vector<32x128xbf16>
    %c0_1 = arith.constant 0 : index
    %c0_2 = arith.constant 0 : index
    %1 = vector.load %arg2[%c0_1, %c0_2] : memref<128x128xbf16, #tpu.memory_space<vmem>>, vector<128x128xbf16>
    %cst = arith.constant dense<0.000000e+00> : vector<32x128xf32>
    %2 = tpu.matmul %0, %1, %cst {dimension_numbers = #tpu.dot_dimension_numbers<[1], [0], [0], [1], [0, 0, 1, 1], [], []>} : vector<32x128xbf16>, vector<128x128xbf16>, vector<32x128xf32> -> vector<32x128xf32>
    %c0_3 = arith.constant 0 : index
    %c0_4 = arith.constant 0 : index
    %3 = vector.load %arg3[%c0_3, %c0_4] : memref<1x128xf32, #tpu.memory_space<vmem>>, vector<1x128xf32>
    %4 = vector.broadcast %3 : vector<1x128xf32> to vector<32x128xf32>
    %5 = arith.addf %2, %4 : vector<32x128xf32>
    %c0_5 = arith.constant 0 : index
    %6 = memref.load %arg0[%c0_5] : memref<4xf32, #tpu.memory_space<smem>>
    %cst_6 = arith.constant 0.000000e+00 : f32
    %7 = vector.broadcast %cst_6 : f32 to vector<32x128xf32>
    %8 = arith.cmpf oge, %5, %7 : vector<32x128xf32>
    %9 = vector.broadcast %6 : f32 to vector<32x128xf32>
    %10 = arith.mulf %9, %5 : vector<32x128xf32>
    %11 = arith.select %8, %5, %10 : vector<32x128xi1>, vector<32x128xf32>
    %cst_7 = arith.constant 0.000000e+00 : f32
    %12 = vector.broadcast %cst_7 : f32 to vector<2x6x6x128xf32>
    %c0_8 = arith.constant 0 : index
    %c0_9 = arith.constant 0 : index
    %c0_10 = arith.constant 0 : index
    %c0_11 = arith.constant 0 : index
    %13 = vector.load %arg8[%c0_8, %c0_9, %c0_10, %c0_11] : memref<2x6x6x128xf32, #tpu.memory_space<vmem>>, vector<2x6x6x128xf32>
    tpu.vector_store %arg8[%c0_8, %c0_9, %c0_10, %c0_11], %12 {strides = array<i32>} : memref<2x6x6x128xf32, #tpu.memory_space<vmem>>, vector<2x6x6x128xf32>,
    %14 = vector.shape_cast %11 : vector<32x128xf32> to vector<2x4x4x128xf32>
    %c0_12 = arith.constant 0 : index
    %c1 = arith.constant 1 : index
    %c1_13 = arith.constant 1 : index
    %c0_14 = arith.constant 0 : index
    %15 = vector.load %arg8[%c0_12, %c1, %c1_13, %c0_14] : memref<2x6x6x128xf32, #tpu.memory_space<vmem>>, vector<2x4x4x128xf32>
    tpu.vector_store %arg8[%c0_12, %c1, %c1_13, %c0_14], %14 {strides = array<i32>} : memref<2x6x6x128xf32, #tpu.memory_space<vmem>>, vector<2x4x4x128xf32>,
    %cst_15 = arith.constant 0.000000e+00 : f32
    %16 = vector.broadcast %cst_15 : f32 to vector<32x8xf32>
    %c0_16 = arith.constant 0 : index
    %c0_17 = arith.constant 0 : index
    %c0_18 = arith.constant 0 : index
    %c0_19 = arith.constant 0 : index
    %17 = vector.load %arg8[%c0_16, %c0_17, %c0_18, %c0_19] : memref<2x6x6x128xf32, #tpu.memory_space<vmem>>, vector<2x4x4x128xf32>
    %18 = vector.shape_cast %17 : vector<2x4x4x128xf32> to vector<32x128xf32>
    %19 = arith.truncf %18 : vector<32x128xf32> to vector<32x128xbf16>
    %c0_20 = arith.constant 0 : index
    %c0_21 = arith.constant 0 : index
    %c0_22 = arith.constant 0 : index
    %20 = vector.load %arg4[%c0_20, %c0_21, %c0_22] : memref<9x128x8xbf16, #tpu.memory_space<vmem>>, vector<1x128x8xbf16>
    %21 = vector.shape_cast %20 : vector<1x128x8xbf16> to vector<128x8xbf16>
    %cst_23 = arith.constant dense<0.000000e+00> : vector<32x8xf32>
    %22 = tpu.matmul %19, %21, %cst_23 {dimension_numbers = #tpu.dot_dimension_numbers<[1], [0], [0], [1], [0, 0, 1, 1], [], []>} : vector<32x128xbf16>, vector<128x8xbf16>, vector<32x8xf32> -> vector<32x8xf32>
    %23 = arith.addf %16, %22 : vector<32x8xf32>
    %c0_24 = arith.constant 0 : index
    %c0_25 = arith.constant 0 : index
    %c1_26 = arith.constant 1 : index
    %c0_27 = arith.constant 0 : index
    %24 = vector.load %arg8[%c0_24, %c0_25, %c1_26, %c0_27] : memref<2x6x6x128xf32, #tpu.memory_space<vmem>>, vector<2x4x4x128xf32>
    %25 = vector.shape_cast %24 : vector<2x4x4x128xf32> to vector<32x128xf32>
    %26 = arith.truncf %25 : vector<32x128xf32> to vector<32x128xbf16>
    %c1_28 = arith.constant 1 : index
    %c0_29 = arith.constant 0 : index
    %c0_30 = arith.constant 0 : index
    %27 = vector.load %arg4[%c1_28, %c0_29, %c0_30] : memref<9x128x8xbf16, #tpu.memory_space<vmem>>, vector<1x128x8xbf16>
    %28 = vector.shape_cast %27 : vector<1x128x8xbf16> to vector<128x8xbf16>
    %cst_31 = arith.constant dense<0.000000e+00> : vector<32x8xf32>
    %29 = tpu.matmul %26, %28, %cst_31 {dimension_numbers = #tpu.dot_dimension_numbers<[1], [0], [0], [1], [0, 0, 1, 1], [], []>} : vector<32x128xbf16>, vector<128x8xbf16>, vector<32x8xf32> -> vector<32x8xf32>
    %30 = arith.addf %23, %29 : vector<32x8xf32>
    %c0_32 = arith.constant 0 : index
    %c0_33 = arith.constant 0 : index
    %c2 = arith.constant 2 : index
    %c0_34 = arith.constant 0 : index
    %31 = vector.load %arg8[%c0_32, %c0_33, %c2, %c0_34] : memref<2x6x6x128xf32, #tpu.memory_space<vmem>>, vector<2x4x4x128xf32>
    %32 = vector.shape_cast %31 : vector<2x4x4x128xf32> to vector<32x128xf32>
    %33 = arith.truncf %32 : vector<32x128xf32> to vector<32x128xbf16>
    %c2_35 = arith.constant 2 : index
    %c0_36 = arith.constant 0 : index
    %c0_37 = arith.constant 0 : index
    %34 = vector.load %arg4[%c2_35, %c0_36, %c0_37] : memref<9x128x8xbf16, #tpu.memory_space<vmem>>, vector<1x128x8xbf16>
    %35 = vector.shape_cast %34 : vector<1x128x8xbf16> to vector<128x8xbf16>
    %cst_38 = arith.constant dense<0.000000e+00> : vector<32x8xf32>
    %36 = tpu.matmul %33, %35, %cst_38 {dimension_numbers = #tpu.dot_dimension_numbers<[1], [0], [0], [1], [0, 0, 1, 1], [], []>} : vector<32x128xbf16>, vector<128x8xbf16>, vector<32x8xf32> -> vector<32x8xf32>
    %37 = arith.addf %30, %36 : vector<32x8xf32>
    %c0_39 = arith.constant 0 : index
    %c1_40 = arith.constant 1 : index
    %c0_41 = arith.constant 0 : index
    %c0_42 = arith.constant 0 : index
    %38 = vector.load %arg8[%c0_39, %c1_40, %c0_41, %c0_42] : memref<2x6x6x128xf32, #tpu.memory_space<vmem>>, vector<2x4x4x128xf32>
    %39 = vector.shape_cast %38 : vector<2x4x4x128xf32> to vector<32x128xf32>
    %40 = arith.truncf %39 : vector<32x128xf32> to vector<32x128xbf16>
    %c3 = arith.constant 3 : index
    %c0_43 = arith.constant 0 : index
    %c0_44 = arith.constant 0 : index
    %41 = vector.load %arg4[%c3, %c0_43, %c0_44] : memref<9x128x8xbf16, #tpu.memory_space<vmem>>, vector<1x128x8xbf16>
    %42 = vector.shape_cast %41 : vector<1x128x8xbf16> to vector<128x8xbf16>
    %cst_45 = arith.constant dense<0.000000e+00> : vector<32x8xf32>
    %43 = tpu.matmul %40, %42, %cst_45 {dimension_numbers = #tpu.dot_dimension_numbers<[1], [0], [0], [1], [0, 0, 1, 1], [], []>} : vector<32x128xbf16>, vector<128x8xbf16>, vector<32x8xf32> -> vector<32x8xf32>
    %44 = arith.addf %37, %43 : vector<32x8xf32>
    %c0_46 = arith.constant 0 : index
    %c1_47 = arith.constant 1 : index
    %c1_48 = arith.constant 1 : index
    %c0_49 = arith.constant 0 : index
    %45 = vector.load %arg8[%c0_46, %c1_47, %c1_48, %c0_49] : memref<2x6x6x128xf32, #tpu.memory_space<vmem>>, vector<2x4x4x128xf32>
    %46 = vector.shape_cast %45 : vector<2x4x4x128xf32> to vector<32x128xf32>
    %47 = arith.truncf %46 : vector<32x128xf32> to vector<32x128xbf16>
    %c4 = arith.constant 4 : index
    %c0_50 = arith.constant 0 : index
    %c0_51 = arith.constant 0 : index
    %48 = vector.load %arg4[%c4, %c0_50, %c0_51] : memref<9x128x8xbf16, #tpu.memory_space<vmem>>, vector<1x128x8xbf16>
    %49 = vector.shape_cast %48 : vector<1x128x8xbf16> to vector<128x8xbf16>
    %cst_52 = arith.constant dense<0.000000e+00> : vector<32x8xf32>
    %50 = tpu.matmul %47, %49, %cst_52 {dimension_numbers = #tpu.dot_dimension_numbers<[1], [0], [0], [1], [0, 0, 1, 1], [], []>} : vector<32x128xbf16>, vector<128x8xbf16>, vector<32x8xf32> -> vector<32x8xf32>
    %51 = arith.addf %44, %50 : vector<32x8xf32>
    %c0_53 = arith.constant 0 : index
    %c1_54 = arith.constant 1 : index
    %c2_55 = arith.constant 2 : index
    %c0_56 = arith.constant 0 : index
    %52 = vector.load %arg8[%c0_53, %c1_54, %c2_55, %c0_56] : memref<2x6x6x128xf32, #tpu.memory_space<vmem>>, vector<2x4x4x128xf32>
    %53 = vector.shape_cast %52 : vector<2x4x4x128xf32> to vector<32x128xf32>
    %54 = arith.truncf %53 : vector<32x128xf32> to vector<32x128xbf16>
    %c5 = arith.constant 5 : index
    %c0_57 = arith.constant 0 : index
    %c0_58 = arith.constant 0 : index
    %55 = vector.load %arg4[%c5, %c0_57, %c0_58] : memref<9x128x8xbf16, #tpu.memory_space<vmem>>, vector<1x128x8xbf16>
    %56 = vector.shape_cast %55 : vector<1x128x8xbf16> to vector<128x8xbf16>
    %cst_59 = arith.constant dense<0.000000e+00> : vector<32x8xf32>
    %57 = tpu.matmul %54, %56, %cst_59 {dimension_numbers = #tpu.dot_dimension_numbers<[1], [0], [0], [1], [0, 0, 1, 1], [], []>} : vector<32x128xbf16>, vector<128x8xbf16>, vector<32x8xf32> -> vector<32x8xf32>
    %58 = arith.addf %51, %57 : vector<32x8xf32>
    %c0_60 = arith.constant 0 : index
    %c2_61 = arith.constant 2 : index
    %c0_62 = arith.constant 0 : index
    %c0_63 = arith.constant 0 : index
    %59 = vector.load %arg8[%c0_60, %c2_61, %c0_62, %c0_63] : memref<2x6x6x128xf32, #tpu.memory_space<vmem>>, vector<2x4x4x128xf32>
    %60 = vector.shape_cast %59 : vector<2x4x4x128xf32> to vector<32x128xf32>
    %61 = arith.truncf %60 : vector<32x128xf32> to vector<32x128xbf16>
    %c6 = arith.constant 6 : index
    %c0_64 = arith.constant 0 : index
    %c0_65 = arith.constant 0 : index
    %62 = vector.load %arg4[%c6, %c0_64, %c0_65] : memref<9x128x8xbf16, #tpu.memory_space<vmem>>, vector<1x128x8xbf16>
    %63 = vector.shape_cast %62 : vector<1x128x8xbf16> to vector<128x8xbf16>
    %cst_66 = arith.constant dense<0.000000e+00> : vector<32x8xf32>
    %64 = tpu.matmul %61, %63, %cst_66 {dimension_numbers = #tpu.dot_dimension_numbers<[1], [0], [0], [1], [0, 0, 1, 1], [], []>} : vector<32x128xbf16>, vector<128x8xbf16>, vector<32x8xf32> -> vector<32x8xf32>
    %65 = arith.addf %58, %64 : vector<32x8xf32>
    %c0_67 = arith.constant 0 : index
    %c2_68 = arith.constant 2 : index
    %c1_69 = arith.constant 1 : index
    %c0_70 = arith.constant 0 : index
    %66 = vector.load %arg8[%c0_67, %c2_68, %c1_69, %c0_70] : memref<2x6x6x128xf32, #tpu.memory_space<vmem>>, vector<2x4x4x128xf32>
    %67 = vector.shape_cast %66 : vector<2x4x4x128xf32> to vector<32x128xf32>
    %68 = arith.truncf %67 : vector<32x128xf32> to vector<32x128xbf16>
    %c7 = arith.constant 7 : index
    %c0_71 = arith.constant 0 : index
    %c0_72 = arith.constant 0 : index
    %69 = vector.load %arg4[%c7, %c0_71, %c0_72] : memref<9x128x8xbf16, #tpu.memory_space<vmem>>, vector<1x128x8xbf16>
    %70 = vector.shape_cast %69 : vector<1x128x8xbf16> to vector<128x8xbf16>
    %cst_73 = arith.constant dense<0.000000e+00> : vector<32x8xf32>
    %71 = tpu.matmul %68, %70, %cst_73 {dimension_numbers = #tpu.dot_dimension_numbers<[1], [0], [0], [1], [0, 0, 1, 1], [], []>} : vector<32x128xbf16>, vector<128x8xbf16>, vector<32x8xf32> -> vector<32x8xf32>
    %72 = arith.addf %65, %71 : vector<32x8xf32>
    %c0_74 = arith.constant 0 : index
    %c2_75 = arith.constant 2 : index
    %c2_76 = arith.constant 2 : index
    %c0_77 = arith.constant 0 : index
    %73 = vector.load %arg8[%c0_74, %c2_75, %c2_76, %c0_77] : memref<2x6x6x128xf32, #tpu.memory_space<vmem>>, vector<2x4x4x128xf32>
    %74 = vector.shape_cast %73 : vector<2x4x4x128xf32> to vector<32x128xf32>
    %75 = arith.truncf %74 : vector<32x128xf32> to vector<32x128xbf16>
    %c8 = arith.constant 8 : index
    %c0_78 = arith.constant 0 : index
    %c0_79 = arith.constant 0 : index
    %76 = vector.load %arg4[%c8, %c0_78, %c0_79] : memref<9x128x8xbf16, #tpu.memory_space<vmem>>, vector<1x128x8xbf16>
    %77 = vector.shape_cast %76 : vector<1x128x8xbf16> to vector<128x8xbf16>
    %cst_80 = arith.constant dense<0.000000e+00> : vector<32x8xf32>
    %78 = tpu.matmul %75, %77, %cst_80 {dimension_numbers = #tpu.dot_dimension_numbers<[1], [0], [0], [1], [0, 0, 1, 1], [], []>} : vector<32x128xbf16>, vector<128x8xbf16>, vector<32x8xf32> -> vector<32x8xf32>
    %79 = arith.addf %72, %78 : vector<32x8xf32>
    %c1_81 = arith.constant 1 : index
    %80 = memref.load %arg0[%c1_81] : memref<4xf32, #tpu.memory_space<smem>>
    %cst_82 = arith.constant 0.000000e+00 : f32
    %81 = vector.broadcast %cst_82 : f32 to vector<32x8xf32>
    %82 = arith.cmpf oge, %79, %81 : vector<32x8xf32>
    %83 = vector.broadcast %80 : f32 to vector<32x8xf32>
    %84 = arith.mulf %83, %79 : vector<32x8xf32>
    %85 = arith.select %82, %79, %84 : vector<32x8xi1>, vector<32x8xf32>
    %cst_83 = arith.constant 0.000000e+00 : f32
    %86 = vector.broadcast %cst_83 : f32 to vector<2x6x6x8xf32>
    %c0_84 = arith.constant 0 : index
    %c0_85 = arith.constant 0 : index
    %c0_86 = arith.constant 0 : index
    %c0_87 = arith.constant 0 : index
    %87 = vector.load %arg9[%c0_84, %c0_85, %c0_86, %c0_87] : memref<2x6x6x8xf32, #tpu.memory_space<vmem>>, vector<2x6x6x8xf32>
    tpu.vector_store %arg9[%c0_84, %c0_85, %c0_86, %c0_87], %86 {strides = array<i32>} : memref<2x6x6x8xf32, #tpu.memory_space<vmem>>, vector<2x6x6x8xf32>,
    %88 = vector.shape_cast %85 : vector<32x8xf32> to vector<2x4x4x8xf32>
    %c0_88 = arith.constant 0 : index
    %c1_89 = arith.constant 1 : index
    %c1_90 = arith.constant 1 : index
    %c0_91 = arith.constant 0 : index
    %89 = vector.load %arg9[%c0_88, %c1_89, %c1_90, %c0_91] : memref<2x6x6x8xf32, #tpu.memory_space<vmem>>, vector<2x4x4x8xf32>
    tpu.vector_store %arg9[%c0_88, %c1_89, %c1_90, %c0_91], %88 {strides = array<i32>} : memref<2x6x6x8xf32, #tpu.memory_space<vmem>>, vector<2x4x4x8xf32>,
    %cst_92 = arith.constant 0.000000e+00 : f32
    %90 = vector.broadcast %cst_92 : f32 to vector<32x128xf32>
    %c0_93 = arith.constant 0 : index
    %c0_94 = arith.constant 0 : index
    %c0_95 = arith.constant 0 : index
    %c0_96 = arith.constant 0 : index
    %91 = vector.load %arg9[%c0_93, %c0_94, %c0_95, %c0_96] : memref<2x6x6x8xf32, #tpu.memory_space<vmem>>, vector<2x4x4x8xf32>
    %92 = vector.shape_cast %91 : vector<2x4x4x8xf32> to vector<32x8xf32>
    %93 = arith.truncf %92 : vector<32x8xf32> to vector<32x8xbf16>
    %c0_97 = arith.constant 0 : index
    %c0_98 = arith.constant 0 : index
    %c0_99 = arith.constant 0 : index
    %94 = vector.load %arg5[%c0_97, %c0_98, %c0_99] : memref<9x8x128xbf16, #tpu.memory_space<vmem>>, vector<1x8x128xbf16>
    %95 = vector.shape_cast %94 : vector<1x8x128xbf16> to vector<8x128xbf16>
    %cst_100 = arith.constant dense<0.000000e+00> : vector<32x128xf32>
    %96 = tpu.matmul %93, %95, %cst_100 {dimension_numbers = #tpu.dot_dimension_numbers<[1], [0], [0], [1], [0, 0, 1, 1], [], []>} : vector<32x8xbf16>, vector<8x128xbf16>, vector<32x128xf32> -> vector<32x128xf32>
    %97 = arith.addf %90, %96 : vector<32x128xf32>
    %c0_101 = arith.constant 0 : index
    %c0_102 = arith.constant 0 : index
    %c1_103 = arith.constant 1 : index
    %c0_104 = arith.constant 0 : index
    %98 = vector.load %arg9[%c0_101, %c0_102, %c1_103, %c0_104] : memref<2x6x6x8xf32, #tpu.memory_space<vmem>>, vector<2x4x4x8xf32>
    %99 = vector.shape_cast %98 : vector<2x4x4x8xf32> to vector<32x8xf32>
    %100 = arith.truncf %99 : vector<32x8xf32> to vector<32x8xbf16>
    %c1_105 = arith.constant 1 : index
    %c0_106 = arith.constant 0 : index
    %c0_107 = arith.constant 0 : index
    %101 = vector.load %arg5[%c1_105, %c0_106, %c0_107] : memref<9x8x128xbf16, #tpu.memory_space<vmem>>, vector<1x8x128xbf16>
    %102 = vector.shape_cast %101 : vector<1x8x128xbf16> to vector<8x128xbf16>
    %cst_108 = arith.constant dense<0.000000e+00> : vector<32x128xf32>
    %103 = tpu.matmul %100, %102, %cst_108 {dimension_numbers = #tpu.dot_dimension_numbers<[1], [0], [0], [1], [0, 0, 1, 1], [], []>} : vector<32x8xbf16>, vector<8x128xbf16>, vector<32x128xf32> -> vector<32x128xf32>
    %104 = arith.addf %97, %103 : vector<32x128xf32>
    %c0_109 = arith.constant 0 : index
    %c0_110 = arith.constant 0 : index
    %c2_111 = arith.constant 2 : index
    %c0_112 = arith.constant 0 : index
    %105 = vector.load %arg9[%c0_109, %c0_110, %c2_111, %c0_112] : memref<2x6x6x8xf32, #tpu.memory_space<vmem>>, vector<2x4x4x8xf32>
    %106 = vector.shape_cast %105 : vector<2x4x4x8xf32> to vector<32x8xf32>
    %107 = arith.truncf %106 : vector<32x8xf32> to vector<32x8xbf16>
    %c2_113 = arith.constant 2 : index
    %c0_114 = arith.constant 0 : index
    %c0_115 = arith.constant 0 : index
    %108 = vector.load %arg5[%c2_113, %c0_114, %c0_115] : memref<9x8x128xbf16, #tpu.memory_space<vmem>>, vector<1x8x128xbf16>
    %109 = vector.shape_cast %108 : vector<1x8x128xbf16> to vector<8x128xbf16>
    %cst_116 = arith.constant dense<0.000000e+00> : vector<32x128xf32>
    %110 = tpu.matmul %107, %109, %cst_116 {dimension_numbers = #tpu.dot_dimension_numbers<[1], [0], [0], [1], [0, 0, 1, 1], [], []>} : vector<32x8xbf16>, vector<8x128xbf16>, vector<32x128xf32> -> vector<32x128xf32>
    %111 = arith.addf %104, %110 : vector<32x128xf32>
    %c0_117 = arith.constant 0 : index
    %c1_118 = arith.constant 1 : index
    %c0_119 = arith.constant 0 : index
    %c0_120 = arith.constant 0 : index
    %112 = vector.load %arg9[%c0_117, %c1_118, %c0_119, %c0_120] : memref<2x6x6x8xf32, #tpu.memory_space<vmem>>, vector<2x4x4x8xf32>
    %113 = vector.shape_cast %112 : vector<2x4x4x8xf32> to vector<32x8xf32>
    %114 = arith.truncf %113 : vector<32x8xf32> to vector<32x8xbf16>
    %c3_121 = arith.constant 3 : index
    %c0_122 = arith.constant 0 : index
    %c0_123 = arith.constant 0 : index
    %115 = vector.load %arg5[%c3_121, %c0_122, %c0_123] : memref<9x8x128xbf16, #tpu.memory_space<vmem>>, vector<1x8x128xbf16>
    %116 = vector.shape_cast %115 : vector<1x8x128xbf16> to vector<8x128xbf16>
    %cst_124 = arith.constant dense<0.000000e+00> : vector<32x128xf32>
    %117 = tpu.matmul %114, %116, %cst_124 {dimension_numbers = #tpu.dot_dimension_numbers<[1], [0], [0], [1], [0, 0, 1, 1], [], []>} : vector<32x8xbf16>, vector<8x128xbf16>, vector<32x128xf32> -> vector<32x128xf32>
    %118 = arith.addf %111, %117 : vector<32x128xf32>
    %c0_125 = arith.constant 0 : index
    %c1_126 = arith.constant 1 : index
    %c1_127 = arith.constant 1 : index
    %c0_128 = arith.constant 0 : index
    %119 = vector.load %arg9[%c0_125, %c1_126, %c1_127, %c0_128] : memref<2x6x6x8xf32, #tpu.memory_space<vmem>>, vector<2x4x4x8xf32>
    %120 = vector.shape_cast %119 : vector<2x4x4x8xf32> to vector<32x8xf32>
    %121 = arith.truncf %120 : vector<32x8xf32> to vector<32x8xbf16>
    %c4_129 = arith.constant 4 : index
    %c0_130 = arith.constant 0 : index
    %c0_131 = arith.constant 0 : index
    %122 = vector.load %arg5[%c4_129, %c0_130, %c0_131] : memref<9x8x128xbf16, #tpu.memory_space<vmem>>, vector<1x8x128xbf16>
    %123 = vector.shape_cast %122 : vector<1x8x128xbf16> to vector<8x128xbf16>
    %cst_132 = arith.constant dense<0.000000e+00> : vector<32x128xf32>
    %124 = tpu.matmul %121, %123, %cst_132 {dimension_numbers = #tpu.dot_dimension_numbers<[1], [0], [0], [1], [0, 0, 1, 1], [], []>} : vector<32x8xbf16>, vector<8x128xbf16>, vector<32x128xf32> -> vector<32x128xf32>
    %125 = arith.addf %118, %124 : vector<32x128xf32>
    %c0_133 = arith.constant 0 : index
    %c1_134 = arith.constant 1 : index
    %c2_135 = arith.constant 2 : index
    %c0_136 = arith.constant 0 : index
    %126 = vector.load %arg9[%c0_133, %c1_134, %c2_135, %c0_136] : memref<2x6x6x8xf32, #tpu.memory_space<vmem>>, vector<2x4x4x8xf32>
    %127 = vector.shape_cast %126 : vector<2x4x4x8xf32> to vector<32x8xf32>
    %128 = arith.truncf %127 : vector<32x8xf32> to vector<32x8xbf16>
    %c5_137 = arith.constant 5 : index
    %c0_138 = arith.constant 0 : index
    %c0_139 = arith.constant 0 : index
    %129 = vector.load %arg5[%c5_137, %c0_138, %c0_139] : memref<9x8x128xbf16, #tpu.memory_space<vmem>>, vector<1x8x128xbf16>
    %130 = vector.shape_cast %129 : vector<1x8x128xbf16> to vector<8x128xbf16>
    %cst_140 = arith.constant dense<0.000000e+00> : vector<32x128xf32>
    %131 = tpu.matmul %128, %130, %cst_140 {dimension_numbers = #tpu.dot_dimension_numbers<[1], [0], [0], [1], [0, 0, 1, 1], [], []>} : vector<32x8xbf16>, vector<8x128xbf16>, vector<32x128xf32> -> vector<32x128xf32>
    %132 = arith.addf %125, %131 : vector<32x128xf32>
    %c0_141 = arith.constant 0 : index
    %c2_142 = arith.constant 2 : index
    %c0_143 = arith.constant 0 : index
    %c0_144 = arith.constant 0 : index
    %133 = vector.load %arg9[%c0_141, %c2_142, %c0_143, %c0_144] : memref<2x6x6x8xf32, #tpu.memory_space<vmem>>, vector<2x4x4x8xf32>
    %134 = vector.shape_cast %133 : vector<2x4x4x8xf32> to vector<32x8xf32>
    %135 = arith.truncf %134 : vector<32x8xf32> to vector<32x8xbf16>
    %c6_145 = arith.constant 6 : index
    %c0_146 = arith.constant 0 : index
    %c0_147 = arith.constant 0 : index
    %136 = vector.load %arg5[%c6_145, %c0_146, %c0_147] : memref<9x8x128xbf16, #tpu.memory_space<vmem>>, vector<1x8x128xbf16>
    %137 = vector.shape_cast %136 : vector<1x8x128xbf16> to vector<8x128xbf16>
    %cst_148 = arith.constant dense<0.000000e+00> : vector<32x128xf32>
    %138 = tpu.matmul %135, %137, %cst_148 {dimension_numbers = #tpu.dot_dimension_numbers<[1], [0], [0], [1], [0, 0, 1, 1], [], []>} : vector<32x8xbf16>, vector<8x128xbf16>, vector<32x128xf32> -> vector<32x128xf32>
    %139 = arith.addf %132, %138 : vector<32x128xf32>
    %c0_149 = arith.constant 0 : index
    %c2_150 = arith.constant 2 : index
    %c1_151 = arith.constant 1 : index
    %c0_152 = arith.constant 0 : index
    %140 = vector.load %arg9[%c0_149, %c2_150, %c1_151, %c0_152] : memref<2x6x6x8xf32, #tpu.memory_space<vmem>>, vector<2x4x4x8xf32>
    %141 = vector.shape_cast %140 : vector<2x4x4x8xf32> to vector<32x8xf32>
    %142 = arith.truncf %141 : vector<32x8xf32> to vector<32x8xbf16>
    %c7_153 = arith.constant 7 : index
    %c0_154 = arith.constant 0 : index
    %c0_155 = arith.constant 0 : index
    %143 = vector.load %arg5[%c7_153, %c0_154, %c0_155] : memref<9x8x128xbf16, #tpu.memory_space<vmem>>, vector<1x8x128xbf16>
    %144 = vector.shape_cast %143 : vector<1x8x128xbf16> to vector<8x128xbf16>
    %cst_156 = arith.constant dense<0.000000e+00> : vector<32x128xf32>
    %145 = tpu.matmul %142, %144, %cst_156 {dimension_numbers = #tpu.dot_dimension_numbers<[1], [0], [0], [1], [0, 0, 1, 1], [], []>} : vector<32x8xbf16>, vector<8x128xbf16>, vector<32x128xf32> -> vector<32x128xf32>
    %146 = arith.addf %139, %145 : vector<32x128xf32>
    %c0_157 = arith.constant 0 : index
    %c2_158 = arith.constant 2 : index
    %c2_159 = arith.constant 2 : index
    %c0_160 = arith.constant 0 : index
    %147 = vector.load %arg9[%c0_157, %c2_158, %c2_159, %c0_160] : memref<2x6x6x8xf32, #tpu.memory_space<vmem>>, vector<2x4x4x8xf32>
    %148 = vector.shape_cast %147 : vector<2x4x4x8xf32> to vector<32x8xf32>
    %149 = arith.truncf %148 : vector<32x8xf32> to vector<32x8xbf16>
    %c8_161 = arith.constant 8 : index
    %c0_162 = arith.constant 0 : index
    %c0_163 = arith.constant 0 : index
    %150 = vector.load %arg5[%c8_161, %c0_162, %c0_163] : memref<9x8x128xbf16, #tpu.memory_space<vmem>>, vector<1x8x128xbf16>
    %151 = vector.shape_cast %150 : vector<1x8x128xbf16> to vector<8x128xbf16>
    %cst_164 = arith.constant dense<0.000000e+00> : vector<32x128xf32>
    %152 = tpu.matmul %149, %151, %cst_164 {dimension_numbers = #tpu.dot_dimension_numbers<[1], [0], [0], [1], [0, 0, 1, 1], [], []>} : vector<32x8xbf16>, vector<8x128xbf16>, vector<32x128xf32> -> vector<32x128xf32>
    %153 = arith.addf %146, %152 : vector<32x128xf32>
    %c2_165 = arith.constant 2 : index
    %154 = memref.load %arg0[%c2_165] : memref<4xf32, #tpu.memory_space<smem>>
    %cst_166 = arith.constant 0.000000e+00 : f32
    %155 = vector.broadcast %cst_166 : f32 to vector<32x128xf32>
    %156 = arith.cmpf oge, %153, %155 : vector<32x128xf32>
    %157 = vector.broadcast %154 : f32 to vector<32x128xf32>
    %158 = arith.mulf %157, %153 : vector<32x128xf32>
    %159 = arith.select %156, %153, %158 : vector<32x128xi1>, vector<32x128xf32>
    %160 = arith.subf %159, %11 : vector<32x128xf32>
    %cst_167 = arith.constant 0.000000e+00 : f32
    %161 = vector.broadcast %cst_167 : f32 to vector<2x6x6x128xf32>
    %c0_168 = arith.constant 0 : index
    %c0_169 = arith.constant 0 : index
    %c0_170 = arith.constant 0 : index
    %c0_171 = arith.constant 0 : index
    %162 = vector.load %arg10[%c0_168, %c0_169, %c0_170, %c0_171] : memref<2x6x6x128xf32, #tpu.memory_space<vmem>>, vector<2x6x6x128xf32>
    tpu.vector_store %arg10[%c0_168, %c0_169, %c0_170, %c0_171], %161 {strides = array<i32>} : memref<2x6x6x128xf32, #tpu.memory_space<vmem>>, vector<2x6x6x128xf32>,
    %163 = vector.shape_cast %160 : vector<32x128xf32> to vector<2x4x4x128xf32>
    %c0_172 = arith.constant 0 : index
    %c1_173 = arith.constant 1 : index
    %c1_174 = arith.constant 1 : index
    %c0_175 = arith.constant 0 : index
    %164 = vector.load %arg10[%c0_172, %c1_173, %c1_174, %c0_175] : memref<2x6x6x128xf32, #tpu.memory_space<vmem>>, vector<2x4x4x128xf32>
    tpu.vector_store %arg10[%c0_172, %c1_173, %c1_174, %c0_175], %163 {strides = array<i32>} : memref<2x6x6x128xf32, #tpu.memory_space<vmem>>, vector<2x4x4x128xf32>,
    %cst_176 = arith.constant 0.000000e+00 : f32
    %165 = vector.broadcast %cst_176 : f32 to vector<32x8xf32>
    %c0_177 = arith.constant 0 : index
    %c0_178 = arith.constant 0 : index
    %c0_179 = arith.constant 0 : index
    %c0_180 = arith.constant 0 : index
    %166 = vector.load %arg10[%c0_177, %c0_178, %c0_179, %c0_180] : memref<2x6x6x128xf32, #tpu.memory_space<vmem>>, vector<2x4x4x128xf32>
    %167 = vector.shape_cast %166 : vector<2x4x4x128xf32> to vector<32x128xf32>
    %168 = arith.truncf %167 : vector<32x128xf32> to vector<32x128xbf16>
    %c0_181 = arith.constant 0 : index
    %c0_182 = arith.constant 0 : index
    %c0_183 = arith.constant 0 : index
    %169 = vector.load %arg6[%c0_181, %c0_182, %c0_183] : memref<9x128x8xbf16, #tpu.memory_space<vmem>>, vector<1x128x8xbf16>
    %170 = vector.shape_cast %169 : vector<1x128x8xbf16> to vector<128x8xbf16>
    %cst_184 = arith.constant dense<0.000000e+00> : vector<32x8xf32>
    %171 = tpu.matmul %168, %170, %cst_184 {dimension_numbers = #tpu.dot_dimension_numbers<[1], [0], [0], [1], [0, 0, 1, 1], [], []>} : vector<32x128xbf16>, vector<128x8xbf16>, vector<32x8xf32> -> vector<32x8xf32>
    %172 = arith.addf %165, %171 : vector<32x8xf32>
    %c0_185 = arith.constant 0 : index
    %c0_186 = arith.constant 0 : index
    %c1_187 = arith.constant 1 : index
    %c0_188 = arith.constant 0 : index
    %173 = vector.load %arg10[%c0_185, %c0_186, %c1_187, %c0_188] : memref<2x6x6x128xf32, #tpu.memory_space<vmem>>, vector<2x4x4x128xf32>
    %174 = vector.shape_cast %173 : vector<2x4x4x128xf32> to vector<32x128xf32>
    %175 = arith.truncf %174 : vector<32x128xf32> to vector<32x128xbf16>
    %c1_189 = arith.constant 1 : index
    %c0_190 = arith.constant 0 : index
    %c0_191 = arith.constant 0 : index
    %176 = vector.load %arg6[%c1_189, %c0_190, %c0_191] : memref<9x128x8xbf16, #tpu.memory_space<vmem>>, vector<1x128x8xbf16>
    %177 = vector.shape_cast %176 : vector<1x128x8xbf16> to vector<128x8xbf16>
    %cst_192 = arith.constant dense<0.000000e+00> : vector<32x8xf32>
    %178 = tpu.matmul %175, %177, %cst_192 {dimension_numbers = #tpu.dot_dimension_numbers<[1], [0], [0], [1], [0, 0, 1, 1], [], []>} : vector<32x128xbf16>, vector<128x8xbf16>, vector<32x8xf32> -> vector<32x8xf32>
    %179 = arith.addf %172, %178 : vector<32x8xf32>
    %c0_193 = arith.constant 0 : index
    %c0_194 = arith.constant 0 : index
    %c2_195 = arith.constant 2 : index
    %c0_196 = arith.constant 0 : index
    %180 = vector.load %arg10[%c0_193, %c0_194, %c2_195, %c0_196] : memref<2x6x6x128xf32, #tpu.memory_space<vmem>>, vector<2x4x4x128xf32>
    %181 = vector.shape_cast %180 : vector<2x4x4x128xf32> to vector<32x128xf32>
    %182 = arith.truncf %181 : vector<32x128xf32> to vector<32x128xbf16>
    %c2_197 = arith.constant 2 : index
    %c0_198 = arith.constant 0 : index
    %c0_199 = arith.constant 0 : index
    %183 = vector.load %arg6[%c2_197, %c0_198, %c0_199] : memref<9x128x8xbf16, #tpu.memory_space<vmem>>, vector<1x128x8xbf16>
    %184 = vector.shape_cast %183 : vector<1x128x8xbf16> to vector<128x8xbf16>
    %cst_200 = arith.constant dense<0.000000e+00> : vector<32x8xf32>
    %185 = tpu.matmul %182, %184, %cst_200 {dimension_numbers = #tpu.dot_dimension_numbers<[1], [0], [0], [1], [0, 0, 1, 1], [], []>} : vector<32x128xbf16>, vector<128x8xbf16>, vector<32x8xf32> -> vector<32x8xf32>
    %186 = arith.addf %179, %185 : vector<32x8xf32>
    %c0_201 = arith.constant 0 : index
    %c1_202 = arith.constant 1 : index
    %c0_203 = arith.constant 0 : index
    %c0_204 = arith.constant 0 : index
    %187 = vector.load %arg10[%c0_201, %c1_202, %c0_203, %c0_204] : memref<2x6x6x128xf32, #tpu.memory_space<vmem>>, vector<2x4x4x128xf32>
    %188 = vector.shape_cast %187 : vector<2x4x4x128xf32> to vector<32x128xf32>
    %189 = arith.truncf %188 : vector<32x128xf32> to vector<32x128xbf16>
    %c3_205 = arith.constant 3 : index
    %c0_206 = arith.constant 0 : index
    %c0_207 = arith.constant 0 : index
    %190 = vector.load %arg6[%c3_205, %c0_206, %c0_207] : memref<9x128x8xbf16, #tpu.memory_space<vmem>>, vector<1x128x8xbf16>
    %191 = vector.shape_cast %190 : vector<1x128x8xbf16> to vector<128x8xbf16>
    %cst_208 = arith.constant dense<0.000000e+00> : vector<32x8xf32>
    %192 = tpu.matmul %189, %191, %cst_208 {dimension_numbers = #tpu.dot_dimension_numbers<[1], [0], [0], [1], [0, 0, 1, 1], [], []>} : vector<32x128xbf16>, vector<128x8xbf16>, vector<32x8xf32> -> vector<32x8xf32>
    %193 = arith.addf %186, %192 : vector<32x8xf32>
    %c0_209 = arith.constant 0 : index
    %c1_210 = arith.constant 1 : index
    %c1_211 = arith.constant 1 : index
    %c0_212 = arith.constant 0 : index
    %194 = vector.load %arg10[%c0_209, %c1_210, %c1_211, %c0_212] : memref<2x6x6x128xf32, #tpu.memory_space<vmem>>, vector<2x4x4x128xf32>
    %195 = vector.shape_cast %194 : vector<2x4x4x128xf32> to vector<32x128xf32>
    %196 = arith.truncf %195 : vector<32x128xf32> to vector<32x128xbf16>
    %c4_213 = arith.constant 4 : index
    %c0_214 = arith.constant 0 : index
    %c0_215 = arith.constant 0 : index
    %197 = vector.load %arg6[%c4_213, %c0_214, %c0_215] : memref<9x128x8xbf16, #tpu.memory_space<vmem>>, vector<1x128x8xbf16>
    %198 = vector.shape_cast %197 : vector<1x128x8xbf16> to vector<128x8xbf16>
    %cst_216 = arith.constant dense<0.000000e+00> : vector<32x8xf32>
    %199 = tpu.matmul %196, %198, %cst_216 {dimension_numbers = #tpu.dot_dimension_numbers<[1], [0], [0], [1], [0, 0, 1, 1], [], []>} : vector<32x128xbf16>, vector<128x8xbf16>, vector<32x8xf32> -> vector<32x8xf32>
    %200 = arith.addf %193, %199 : vector<32x8xf32>
    %c0_217 = arith.constant 0 : index
    %c1_218 = arith.constant 1 : index
    %c2_219 = arith.constant 2 : index
    %c0_220 = arith.constant 0 : index
    %201 = vector.load %arg10[%c0_217, %c1_218, %c2_219, %c0_220] : memref<2x6x6x128xf32, #tpu.memory_space<vmem>>, vector<2x4x4x128xf32>
    %202 = vector.shape_cast %201 : vector<2x4x4x128xf32> to vector<32x128xf32>
    %203 = arith.truncf %202 : vector<32x128xf32> to vector<32x128xbf16>
    %c5_221 = arith.constant 5 : index
    %c0_222 = arith.constant 0 : index
    %c0_223 = arith.constant 0 : index
    %204 = vector.load %arg6[%c5_221, %c0_222, %c0_223] : memref<9x128x8xbf16, #tpu.memory_space<vmem>>, vector<1x128x8xbf16>
    %205 = vector.shape_cast %204 : vector<1x128x8xbf16> to vector<128x8xbf16>
    %cst_224 = arith.constant dense<0.000000e+00> : vector<32x8xf32>
    %206 = tpu.matmul %203, %205, %cst_224 {dimension_numbers = #tpu.dot_dimension_numbers<[1], [0], [0], [1], [0, 0, 1, 1], [], []>} : vector<32x128xbf16>, vector<128x8xbf16>, vector<32x8xf32> -> vector<32x8xf32>
    %207 = arith.addf %200, %206 : vector<32x8xf32>
    %c0_225 = arith.constant 0 : index
    %c2_226 = arith.constant 2 : index
    %c0_227 = arith.constant 0 : index
    %c0_228 = arith.constant 0 : index
    %208 = vector.load %arg10[%c0_225, %c2_226, %c0_227, %c0_228] : memref<2x6x6x128xf32, #tpu.memory_space<vmem>>, vector<2x4x4x128xf32>
    %209 = vector.shape_cast %208 : vector<2x4x4x128xf32> to vector<32x128xf32>
    %210 = arith.truncf %209 : vector<32x128xf32> to vector<32x128xbf16>
    %c6_229 = arith.constant 6 : index
    %c0_230 = arith.constant 0 : index
    %c0_231 = arith.constant 0 : index
    %211 = vector.load %arg6[%c6_229, %c0_230, %c0_231] : memref<9x128x8xbf16, #tpu.memory_space<vmem>>, vector<1x128x8xbf16>
    %212 = vector.shape_cast %211 : vector<1x128x8xbf16> to vector<128x8xbf16>
    %cst_232 = arith.constant dense<0.000000e+00> : vector<32x8xf32>
    %213 = tpu.matmul %210, %212, %cst_232 {dimension_numbers = #tpu.dot_dimension_numbers<[1], [0], [0], [1], [0, 0, 1, 1], [], []>} : vector<32x128xbf16>, vector<128x8xbf16>, vector<32x8xf32> -> vector<32x8xf32>
    %214 = arith.addf %207, %213 : vector<32x8xf32>
    %c0_233 = arith.constant 0 : index
    %c2_234 = arith.constant 2 : index
    %c1_235 = arith.constant 1 : index
    %c0_236 = arith.constant 0 : index
    %215 = vector.load %arg10[%c0_233, %c2_234, %c1_235, %c0_236] : memref<2x6x6x128xf32, #tpu.memory_space<vmem>>, vector<2x4x4x128xf32>
    %216 = vector.shape_cast %215 : vector<2x4x4x128xf32> to vector<32x128xf32>
    %217 = arith.truncf %216 : vector<32x128xf32> to vector<32x128xbf16>
    %c7_237 = arith.constant 7 : index
    %c0_238 = arith.constant 0 : index
    %c0_239 = arith.constant 0 : index
    %218 = vector.load %arg6[%c7_237, %c0_238, %c0_239] : memref<9x128x8xbf16, #tpu.memory_space<vmem>>, vector<1x128x8xbf16>
    %219 = vector.shape_cast %218 : vector<1x128x8xbf16> to vector<128x8xbf16>
    %cst_240 = arith.constant dense<0.000000e+00> : vector<32x8xf32>
    %220 = tpu.matmul %217, %219, %cst_240 {dimension_numbers = #tpu.dot_dimension_numbers<[1], [0], [0], [1], [0, 0, 1, 1], [], []>} : vector<32x128xbf16>, vector<128x8xbf16>, vector<32x8xf32> -> vector<32x8xf32>
    %221 = arith.addf %214, %220 : vector<32x8xf32>
    %c0_241 = arith.constant 0 : index
    %c2_242 = arith.constant 2 : index
    %c2_243 = arith.constant 2 : index
    %c0_244 = arith.constant 0 : index
    %222 = vector.load %arg10[%c0_241, %c2_242, %c2_243, %c0_244] : memref<2x6x6x128xf32, #tpu.memory_space<vmem>>, vector<2x4x4x128xf32>
    %223 = vector.shape_cast %222 : vector<2x4x4x128xf32> to vector<32x128xf32>
    %224 = arith.truncf %223 : vector<32x128xf32> to vector<32x128xbf16>
    %c8_245 = arith.constant 8 : index
    %c0_246 = arith.constant 0 : index
    %c0_247 = arith.constant 0 : index
    %225 = vector.load %arg6[%c8_245, %c0_246, %c0_247] : memref<9x128x8xbf16, #tpu.memory_space<vmem>>, vector<1x128x8xbf16>
    %226 = vector.shape_cast %225 : vector<1x128x8xbf16> to vector<128x8xbf16>
    %cst_248 = arith.constant dense<0.000000e+00> : vector<32x8xf32>
    %227 = tpu.matmul %224, %226, %cst_248 {dimension_numbers = #tpu.dot_dimension_numbers<[1], [0], [0], [1], [0, 0, 1, 1], [], []>} : vector<32x128xbf16>, vector<128x8xbf16>, vector<32x8xf32> -> vector<32x8xf32>
    %228 = arith.addf %221, %227 : vector<32x8xf32>
    %c3_249 = arith.constant 3 : index
    %229 = memref.load %arg0[%c3_249] : memref<4xf32, #tpu.memory_space<smem>>
    %cst_250 = arith.constant 0.000000e+00 : f32
    %230 = vector.broadcast %cst_250 : f32 to vector<32x8xf32>
    %231 = arith.cmpf oge, %228, %230 : vector<32x8xf32>
    %232 = vector.broadcast %229 : f32 to vector<32x8xf32>
    %233 = arith.mulf %232, %228 : vector<32x8xf32>
    %234 = arith.select %231, %228, %233 : vector<32x8xi1>, vector<32x8xf32>
    %235 = arith.addf %234, %85 : vector<32x8xf32>
    %c0_251 = arith.constant 0 : index
    %c0_252 = arith.constant 0 : index
    %236 = vector.load %arg7[%c0_251, %c0_252] : memref<32x8xf32, #tpu.memory_space<vmem>>, vector<32x8xf32>
    tpu.vector_store %arg7[%c0_251, %c0_252], %235 {strides = array<i32>} : memref<32x8xf32, #tpu.memory_space<vmem>>, vector<32x8xf32>,
    return
  }
}

</mosaic_0001>

<bundles_post_ra>
// kernel: down_block_forward.1
= control target key start
LH: loop header
LB: loop body
LE: loop exit
PB: predicated region body
PF: predicated region fallthrough
CT: control target
= control target key end

     0   :  { %12 = vsyncpa [#allocation7], 0  ;;  %s5928_s0 = inlined_call_operand.vmem [shape: f32[4], index: 0, kind: input, shape index: {}]   ;;  %s5929_s1 = inlined_call_operand.vmem [shape: bf16[32,128], index: 1, kind: input, shape index: {}]   ;;  %s5930_s2 = inlined_call_operand.vmem [shape: bf16[128,128], index: 2, kind: input, shape index: {}]   ;;  %s5931_s3 = inlined_call_operand.vmem [shape: f32[1,128], index: 3, kind: input, shape index: {}]   ;;  %s5932_s4 = inlined_call_operand.vmem [shape: bf16[9,128,8], index: 4, kind: input, shape index: {}]   ;;  %s5933_s5 = inlined_call_operand.vmem [shape: bf16[9,8,128], index: 5, kind: input, shape index: {}]   ;;  %s5934_s6 = inlined_call_operand.vmem [shape: bf16[9,128,8], index: 6, kind: input, shape index: {}]   ;;  %s5935_s7 = inlined_call_operand.hbm [shape: f32[32,8], index: 7, kind: output, shape index: {}]  }
   0x1   :  { %13 = vsyncpa [#allocation6], 0  ;;  %s20_s26 = sshll.u32 %s5928_s0, 4  ;;  %s21_s26 = int_to_ptr.vmem [resolvable:$true] %s20_s26 }
   0x2   :  { %s5206_s27 = scalar_lea.vmem %s21_s26, 16  ;;  %p5211_p1 = scmp.lt.s32.totalorder %s21_s26, %s21_s26 }
   0x3   :  { %p5207_p0 = scmp.ne.s32.totalorder %s21_s26, %s5206_s27  ;;  %p5212_p2 = scmp.lt.s32.totalorder %s5206_s27, %s5206_s27 }
   0x5   :  { %p5213_p3 = por %p5212_p2, %p5211_p1 }
   0x7   :  { %p5214_p4 = pnand %p5213_p3, %p5207_p0 }
   0x9   :  { %5217 = shalt.err (!%p5214_p4)
}
   0xa   :  { %s5244_s28 = smov [#allocation5]  }
   0xb   :  { %23 = dma.vmem_to_smem %s21_s26, 16, %s5244_s28, [#allocation7]  }
   0xc   :  { %5240 = dma.done.wait [#allocation7], 16  }
   0xd   :  { %5241 = vsyncadd [#allocation7], 4294967280 }
   0xe   :  { %39 = sfence }
   0xf   :  { %v4944_v0 = vld [vmem:[%s5930_s2] sm:$0xff]   ;;  %v4945_v1 = vld [vmem:[%s5930_s2 + $0x8] sm:$0xff]   ;;  %v4946_v2 = vld [vmem:[%s5930_s2 + $0x10] sm:$0xff]   ;;  %v5245_v15 = vmov 0.0   ;;  %s177_s17 = sld [smem:[#allocation5]]  ;;  %vm1526_vm4 = vcmask 62464  }
  0x10   :  { %4400 = vmatprep.subr.bf16.mxu1 %v4944_v0  ;;  %v4947_v3 = vld [vmem:[%s5930_s2 + $0x18] sm:$0xff]   ;;  %v4952_v4 = vld [vmem:[%s5929_s1] sm:$0xff]   ;;  %v4949_v6 = vld [vmem:[%s5930_s2 + $0x28] sm:$0xff]   ;;  %198 = vst [vmem:[#allocation2 + $0x38] sm:$0x3f] %v5245_v15  ;;  %vm1623_vm5 = vcmask 1043456  }
  0x11   :  { %4401 = vmatpush3.bf16.msra.mxu1 %v4944_v0  ;;  %4416 = vmatprep.mubr.bf16.mxu1 %v4952_v4  ;;  %v4948_v5 = vld [vmem:[%s5930_s2 + $0x20] sm:$0xff]   ;;  %v4950_v7 = vld [vmem:[%s5930_s2 + $0x30] sm:$0xff]   ;;  %v4951_v8 = vld [vmem:[%s5930_s2 + $0x38] sm:$0xff]   ;;  %199 = vst [vmem:[#allocation2 + $0x40] sm:$0x3f] %v5245_v15  ;;  %s3954_s18 = sld [smem:[#allocation5 + $0x1]] }
  0x12   :  { %4402 = vmatprep.subr.bf16.mxu1 %v4945_v1  ;;  %v4954_v9 = vld [vmem:[%s5932_s4 + $0x40] sm:$0xff]   ;;  %v4953_v10 = vld [vmem:[%s5929_s1 + $0x8] sm:$0xff]   ;;  %v4956_v12 = vld [vmem:[%s5932_s4 + $0x50] sm:$0xff]   ;;  %191 = vst [vmem:[#allocation2] sm:$0x3f] %v5245_v15  ;;  %vm1552_vm7 = vcmask 60416  }
  0x13   :  { %v4955_v11 = vld [vmem:[%s5932_s4 + $0x48] sm:$0xff]   ;;  %v4957_v13 = vld [vmem:[%s5932_s4 + $0x58] sm:$0xff]   ;;  %v4958_v14 = vld [vmem:[%s5932_s4 + $0x60] sm:$0xff]   ;;  %192 = vst [vmem:[#allocation2 + $0x8] sm:$0x3f] %v5245_v15  ;;  %vm1616_vm11 = vcmask 64512  }
  0x14   :  { %193 = vst [vmem:[#allocation2 + $0x10] sm:$0x3f] %v5245_v15  ;;  %194 = vst [vmem:[#allocation2 + $0x18] sm:$0x3f] %v5245_v15  ;;  %v4959_v16 = vld [vmem:[%s5932_s4 + $0x68] sm:$0xff]   ;;  %v4960_v17 = vld [vmem:[%s5932_s4 + $0x70] sm:$0xff]  }
  0x15   :  { %4403 = vmatpush3.bf16.msra.mxu1 %v4945_v1  ;;  %195 = vst [vmem:[#allocation2 + $0x20] sm:$0x3f] %v5245_v15  ;;  %196 = vst [vmem:[#allocation2 + $0x28] sm:$0x3f] %v5245_v15  ;;  %v4961_v18 = vld [vmem:[%s5932_s4 + $0x78] sm:$0xff]   ;;  %v4964_v19 = vld [vmem:[%s5932_s4] sm:$0xff]   ;;  %v182_v22 = vstv %s177_s17 }
  0x16   :  { %4404 = vmatprep.subr.bf16.mxu1 %v4946_v2  ;;  %197 = vst [vmem:[#allocation2 + $0x30] sm:$0x3f] %v5245_v15  ;;  %200 = vst [vmem:[#allocation2 + $0x48] sm:$0x3f] %v5245_v15  ;;  %v3743_v20 = vld [vmem:[%s5931_s3] ss:$0 sm:$0xff] }
  0x17   :  { %201 = vst [vmem:[#allocation2 + $0x50] sm:$0x3f] %v5245_v15  ;;  %202 = vst [vmem:[#allocation2 + $0x58] sm:$0x3f] %v5245_v15  ;;  %v4969_v50 = vld [vmem:[%s5932_s4 + $0x8] sm:$0xff]   ;;  %v4970_v52 = vld [vmem:[%s5932_s4 + $0x10] sm:$0xff]  }
  0x18   :  { %2383 = vst [vmem:[#allocation4] sm:$0x3f] %v5245_v15  ;;  %2384 = vst [vmem:[#allocation4 + $0x8] sm:$0x3f] %v5245_v15  ;;  %v4971_v53 = vld [vmem:[%s5932_s4 + $0x18] sm:$0xff]   ;;  %v4972_v54 = vld [vmem:[%s5932_s4 + $0x20] sm:$0xff]  }
  0x19   :  { %4405 = vmatpush3.bf16.msra.mxu1 %v4946_v2  ;;  %2385 = vst [vmem:[#allocation4 + $0x10] sm:$0x3f] %v5245_v15  ;;  %2386 = vst [vmem:[#allocation4 + $0x18] sm:$0x3f] %v5245_v15  ;;  %v4973_v55 = vld [vmem:[%s5932_s4 + $0x28] sm:$0xff]   ;;  %v4974_v56 = vld [vmem:[%s5932_s4 + $0x30] sm:$0xff]  }
  0x1a   :  { %4406 = vmatprep.subr.bf16.mxu1 %v4947_v3  ;;  %2387 = vst [vmem:[#allocation4 + $0x20] sm:$0x3f] %v5245_v15  ;;  %2388 = vst [vmem:[#allocation4 + $0x28] sm:$0x3f] %v5245_v15  ;;  %v4975_v57 = vld [vmem:[%s5932_s4 + $0x38] sm:$0xff]   ;;  %v4978_v59 = vld [vmem:[%s5932_s4 + $0x80] sm:$0xff]  }
  0x1b   :  { %2389 = vst [vmem:[#allocation4 + $0x30] sm:$0x3f] %v5245_v15  ;;  %2390 = vst [vmem:[#allocation4 + $0x38] sm:$0x3f] %v5245_v15  ;;  %v4981_v0 = vld [vmem:[%s5932_s4 + $0x88] sm:$0xff]   ;;  %v4982_v2 = vld [vmem:[%s5932_s4 + $0x90] sm:$0xff]  }
  0x1c   :  { %2391 = vst [vmem:[#allocation4 + $0x40] sm:$0x3f] %v5245_v15  ;;  %2392 = vst [vmem:[#allocation4 + $0x48] sm:$0x3f] %v5245_v15  ;;  %v4984_v4 = vld [vmem:[%s5932_s4 + $0xa0] sm:$0xff]  }
  0x1d   :  { %4407 = vmatpush3.bf16.msra.mxu1 %v4947_v3  ;;  %2393 = vst [vmem:[#allocation4 + $0x50] sm:$0x3f] %v5245_v15  ;;  %2394 = vst [vmem:[#allocation4 + $0x58] sm:$0x3f] %v5245_v15  ;;  %v4983_v3 = vld [vmem:[%s5932_s4 + $0x98] sm:$0xff]  }
  0x1e   :  { %4408 = vmatprep.subr.bf16.mxu1 %v4948_v5  ;;  %1534 = vst.msk [vmem:[#allocation3 + $0x38] sm:$0x3f] %vm1526_vm4, %v5245_v15  ;;  %1535 = vst.msk [vmem:[#allocation3 + $0x40] sm:$0x3f] %vm1526_vm4, %v5245_v15 }
  0x1f   :  { %1527 = vst.msk [vmem:[#allocation3] sm:$0x3f] %vm1526_vm4, %v5245_v15  ;;  %1528 = vst.msk [vmem:[#allocation3 + $0x8] sm:$0x3f] %vm1526_vm4, %v5245_v15 }
  0x20   :  { %1529 = vst.msk [vmem:[#allocation3 + $0x10] sm:$0x3f] %vm1526_vm4, %v5245_v15  ;;  %1530 = vst.msk [vmem:[#allocation3 + $0x18] sm:$0x3f] %vm1526_vm4, %v5245_v15 }
  0x21   :  { %4409 = vmatpush3.bf16.msra.mxu1 %v4948_v5  ;;  %v4985_v5 = vld [vmem:[%s5932_s4 + $0xa8] sm:$0xff]   ;;  %1531 = vst.msk [vmem:[#allocation3 + $0x20] sm:$0x3f] %vm1526_vm4, %v5245_v15  ;;  %1532 = vst.msk [vmem:[#allocation3 + $0x28] sm:$0x3f] %vm1526_vm4, %v5245_v15 }
  0x22   :  { %4410 = vmatprep.subr.bf16.mxu1 %v4949_v6  ;;  %1533 = vst.msk [vmem:[#allocation3 + $0x30] sm:$0x3f] %vm1526_vm4, %v5245_v15  ;;  %1536 = vst.msk [vmem:[#allocation3 + $0x48] sm:$0x3f] %vm1526_vm4, %v5245_v15 }
  0x23   :  { %1537 = vst.msk [vmem:[#allocation3 + $0x50] sm:$0x3f] %vm1526_vm4, %v5245_v15  ;;  %1538 = vst.msk [vmem:[#allocation3 + $0x58] sm:$0x3f] %vm1526_vm4, %v5245_v15  ;;  %v3963_v15 = vld [vmem:[%s5933_s5 + $0xc] sm:$0xf] }
  0x25   :  { %4411 = vmatpush3.bf16.msra.mxu1 %v4949_v6  ;;  %v4986_v6 = vld [vmem:[%s5932_s4 + $0xb0] sm:$0xff]  }
  0x26   :  { %4412 = vmatprep.subr.bf16.mxu1 %v4950_v7 }
  0x29   :  { %4413 = vmatpush3.bf16.msra.mxu1 %v4950_v7  ;;  %v4987_v7 = vld [vmem:[%s5932_s4 + $0xb8] sm:$0xff]  }
  0x2a   :  { %4414 = vmatprep.subr.bf16.mxu1 %v4951_v8 }
  0x2d   :  { %4415 = vmatpush3.bf16.msra.mxu1 %v4951_v8 }
  0x2e   :  { %4420 = vmatprep.subr.bf16.mxu1 %v4954_v9 }
  0x30   :  { %4417 = vmatmul.mubr.bf16.vlgmr.msra.gmra.mrb[0].mxu1 %v4953_v10 }
  0x31   :  { %4421 = vmatpush3.bf16.msra.mxu1 %v4954_v9  ;;  %v4990_v9 = vld [vmem:[%s5932_s4 + $0xc0] sm:$0xff]  }
  0x32   :  { %4422 = vmatprep.subr.bf16.mxu1 %v4955_v11 }
  0x35   :  { %4423 = vmatpush3.bf16.msra.mxu1 %v4955_v11 }
  0x36   :  { %4424 = vmatprep.subr.bf16.mxu1 %v4956_v12 }
  0x39   :  { %4425 = vmatpush3.bf16.msra.mxu1 %v4956_v12 }
  0x3a   :  { %4426 = vmatprep.subr.bf16.mxu1 %v4957_v13 }
  0x3d   :  { %4427 = vmatpush3.bf16.msra.mxu1 %v4957_v13 }
  0x3e   :  { %4428 = vmatprep.subr.bf16.mxu1 %v4958_v14 }
  0x41   :  { %4429 = vmatpush3.bf16.msra.mxu1 %v4958_v14  ;;  %v4993_v14 = vld [vmem:[%s5932_s4 + $0xc8] sm:$0xff]  }
  0x42   :  { %4430 = vmatprep.subr.bf16.mxu1 %v4959_v16 }
  0x45   :  { %4431 = vmatpush3.bf16.msra.mxu1 %v4959_v16 }
  0x46   :  { %4432 = vmatprep.subr.bf16.mxu1 %v4960_v17 }
  0x49   :  { %4433 = vmatpush3.bf16.msra.mxu1 %v4960_v17  ;;  %v4994_v17 = vld [vmem:[%s5932_s4 + $0xd0] sm:$0xff]  }
  0x4a   :  { %4434 = vmatprep.subr.bf16.mxu1 %v4961_v18 }
  0x4d   :  { %4435 = vmatpush3.bf16.msra.mxu1 %v4961_v18  ;;  %v4995_v18 = vld [vmem:[%s5932_s4 + $0xd8] sm:$0xff]  }
  0x4e   :  { %4440 = vmatprep.subr.bf16.mxu1 %v4964_v19 }
 0x103   :  { %v4418_v21 = vpop.f32.mrb[0].mxu1 }
 0x104   :  { %v171_v23 = vadd.f32 %v4418_v21, %v3743_v20  ;;  %v162_v24 = vpop.f32.mrb[1].mxu1  ;;  %v4998_v21 = vld [vmem:[%s5932_s4 + $0xf0] sm:$0xff]  }
 0x105   :  { %v163_v25 = vadd.f32 %v3743_v20, %v162_v24  ;;  %v4419_v26 = vpop.f32.mrb[2].mxu1  ;;  %v5002_v24 = vld [vmem:[%s5932_s4 + $0x100] sm:$0xff]  }
 0x106   :  { %vm180_vm0 = vcmp.ge.f32.partialorder %v171_v23, 0.0  ;;  %v185_v27 = vmul.f32 %v182_v22, %v171_v23  ;;  %v174_v28 = vadd.f32 %v4419_v26, %v3743_v20  ;;  %v165_v29 = vpop.f32.mrb[3].mxu1 }
 0x107   :  { %vm178_vm1 = vcmp.ge.f32.partialorder %v163_v25, 0.0  ;;  %v183_v30 = vmul.f32 %v182_v22, %v163_v25  ;;  %v166_v31 = vadd.f32 %v3743_v20, %v165_v29  ;;  %v4997_v20 = vld [vmem:[%s5932_s4 + $0xe8] sm:$0xff]  }
 0x108   :  { %v5376_v32 = vsel %vm180_vm0, %v171_v23, %v185_v27  ;;  %vm181_vm2 = vcmp.ge.f32.partialorder %v174_v28, 0.0  ;;  %v186_v33 = vmul.f32 %v182_v22, %v174_v28  ;;  %v5005_v29 = vld [vmem:[%s5932_s4 + $0x108] sm:$0xff]  }
 0x109   :  { %v209_v34 = vcombine.high %v5376_v32, %v5376_v32  ;;  %220 = vst [vmem:[#allocation2 + $0x39] sm:$0xf] %v5376_v32  ;;  %v5381_v35 = vsel %vm178_vm1, %v163_v25, %v183_v30  ;;  %vm179_vm3 = vcmp.ge.f32.partialorder %v166_v31, 0.0  ;;  %v184_v36 = vmul.f32 %v182_v22, %v166_v31  ;;  %v4999_v22 = vld [vmem:[%s5932_s4 + $0xf8] sm:$0xff]  }
 0x10a   :  { %v207_v37 = vcombine.high %v5381_v35, %v5381_v35  ;;  %216 = vst [vmem:[#allocation2 + $0x9] sm:$0xf] %v5381_v35  ;;  %v5386_v38 = vsel %vm181_vm2, %v174_v28, %v186_v33  ;;  %v5007_v33 = vld [vmem:[%s5932_s4 + $0x118] sm:$0xff]  }
 0x10b   :  { %221 = vst [vmem:[#allocation2 + $0x41] sm:$0xf] %v209_v34  ;;  %v210_v39 = vcombine.high %v5386_v38, %v5386_v38  ;;  %222 = vst [vmem:[#allocation2 + $0x49] sm:$0xf] %v5386_v38  ;;  %v5391_v40 = vsel %vm179_vm3, %v166_v31, %v184_v36  ;;  %v5006_v31 = vld [vmem:[%s5932_s4 + $0x110] sm:$0xff]   ;;  %v5008_v34 = vld [vmem:[%s5932_s4 + $0x120] sm:$0xff]  }
 0x10c   :  { %217 = vst [vmem:[#allocation2 + $0x11] sm:$0xf] %v207_v37  ;;  %v208_v41 = vcombine.high %v5391_v40, %v5391_v40  ;;  %218 = vst [vmem:[#allocation2 + $0x19] sm:$0xf] %v5391_v40  ;;  %v5009_v36 = vld [vmem:[%s5932_s4 + $0x128] sm:$0xff]   ;;  %v5010_v37 = vld [vmem:[%s5932_s4 + $0x130] sm:$0xff]  }
 0x10d   :  { %223 = vst [vmem:[#allocation2 + $0x51] sm:$0xf] %v210_v39  ;;  %v5011_v39 = vld [vmem:[%s5932_s4 + $0x138] sm:$0xff]  }
 0x10e   :  { %219 = vst [vmem:[#allocation2 + $0x21] sm:$0xf] %v208_v41 }
 0x110   :  { %v4965_v43 = vld [vmem:[#allocation2 + $0x31] ss:$8 sps:$4 sm:$0xff]  }
 0x111   :  { %v4962_v42 = vld [vmem:[#allocation2 + $0x1] ss:$8 sps:$4 sm:$0xff]   ;;  %v4976_v61 = vld [vmem:[#allocation2 + $0x30] ss:$8 sps:$4 sm:$0xff]  }
 0x112   :  { %v4966_v44 = vld [vmem:[#allocation2 + $0x41] ss:$8 sps:$4 sm:$0xff]   ;;  %v4988_v11 = vld [vmem:[#allocation2 + $0x32] ss:$8 sps:$4 sm:$0xff]  }
 0x113   :  { %v4963_v45 = vld [vmem:[#allocation2 + $0x11] ss:$8 sps:$4 sm:$0xff]   ;;  %v4967_v46 = vld [vmem:[#allocation2] ss:$8 sps:$4 sm:$0xff]   ;;  %v291_v49 = vpack.c.bf16 %v4966_v44, %v4965_v43 }
 0x114   :  { %v290_v47 = vpack.c.bf16 %v4963_v45, %v4962_v42  ;;  %v4968_v48 = vld [vmem:[#allocation2 + $0x10] ss:$8 sps:$4 sm:$0xff]   ;;  %v4977_v58 = vld [vmem:[#allocation2 + $0x40] ss:$8 sps:$4 sm:$0xff]  }
 0x115   :  { %v248_v51 = vpack.c.bf16 %v4968_v48, %v4967_v46  ;;  %v4980_v60 = vld [vmem:[#allocation2 + $0x12] ss:$8 sps:$4 sm:$0xff]   ;;  %v4979_v62 = vld [vmem:[#allocation2 + $0x2] ss:$8 sps:$4 sm:$0xff]   ;;  %v249_v63 = vpack.c.bf16 %v4977_v58, %v4976_v61 }
 0x116   :  { %4436 = vmatprep.mubr.bf16.mxu1 %v290_v47  ;;  %v527_v1 = vpack.c.bf16 %v4980_v60, %v4979_v62  ;;  %v4989_v8 = vld [vmem:[#allocation2 + $0x42] ss:$8 sps:$4 sm:$0xff]  }
 0x117   :  { %4437 = vmatmul.mubr.bf16.vlgmr.msra.gmra.mrb[4].mxu1 %v291_v49  ;;  %v4992_v10 = vld [vmem:[#allocation2 + $0x18] ss:$8 sps:$4 sm:$0xff]   ;;  %v4991_v12 = vld [vmem:[#allocation2 + $0x8] ss:$8 sps:$4 sm:$0xff]   ;;  %v528_v13 = vpack.c.bf16 %v4989_v8, %v4988_v11 }
 0x118   :  { %4441 = vmatpush3.bf16.msra.mxu1 %v4964_v19  ;;  %4456 = vmatprep.mubr.bf16.mxu1 %v248_v51  ;;  %v671_v16 = vpack.c.bf16 %v4992_v10, %v4991_v12  ;;  %v4996_v19 = vld [vmem:[%s5932_s4 + $0xe0] sm:$0xff]   ;;  %v5001_v23 = vld [vmem:[#allocation2 + $0x48] ss:$8 sps:$4 sm:$0xff]  }
 0x119   :  { %4442 = vmatprep.subr.bf16.mxu1 %v4969_v50  ;;  %v5004_v25 = vld [vmem:[#allocation2 + $0x19] ss:$8 sps:$4 sm:$0xff]   ;;  %v5003_v27 = vld [vmem:[#allocation2 + $0x9] ss:$8 sps:$4 sm:$0xff]  }
 0x11a   :  { %v5000_v26 = vld [vmem:[#allocation2 + $0x38] ss:$8 sps:$4 sm:$0xff]   ;;  %v815_v30 = vpack.c.bf16 %v5004_v25, %v5003_v27  ;;  %v5013_v41 = vld [vmem:[#allocation2 + $0x49] ss:$8 sps:$4 sm:$0xff]  }
 0x11b   :  { %v672_v28 = vpack.c.bf16 %v5001_v23, %v5000_v26  ;;  %v5014_v42 = vld [vmem:[%s5932_s4 + $0x140] sm:$0xff]   ;;  %v5015_v45 = vld [vmem:[#allocation2 + $0xa] ss:$8 sps:$4 sm:$0xff]  }
 0x11c   :  { %4443 = vmatpush3.bf16.msra.mxu1 %v4969_v50  ;;  %v5016_v43 = vld [vmem:[#allocation2 + $0x1a] ss:$8 sps:$4 sm:$0xff]   ;;  %v5017_v47 = vld [vmem:[%s5932_s4 + $0x148] sm:$0xff]   ;;  %v5018_v49 = vld [vmem:[%s5932_s4 + $0x150] sm:$0xff]  }
 0x11d   :  { %4444 = vmatprep.subr.bf16.mxu1 %v4970_v52  ;;  %v5012_v44 = vld [vmem:[#allocation2 + $0x39] ss:$8 sps:$4 sm:$0xff]   ;;  %v959_v48 = vpack.c.bf16 %v5016_v43, %v5015_v45  ;;  %v5029_v61 = vld [vmem:[%s5932_s4 + $0x188] sm:$0xff]  }
 0x11e   :  { %v816_v46 = vpack.c.bf16 %v5013_v41, %v5012_v44  ;;  %v5019_v50 = vld [vmem:[%s5932_s4 + $0x158] sm:$0xff]   ;;  %v5020_v51 = vld [vmem:[%s5932_s4 + $0x160] sm:$0xff]   ;;  %v5041_v11 = vld [vmem:[%s5932_s4 + $0x1c8] sm:$0xff]  }
 0x11f   :  { %v5024_v58 = vld [vmem:[#allocation2 + $0x3a] ss:$8 sps:$4 sm:$0xff]   ;;  %v5053_v26 = vld [vmem:[%s5932_s4 + $0x208] sm:$0xff]  }
 0x120   :  { %4445 = vmatpush3.bf16.msra.mxu1 %v4970_v52  ;;  %v5021_v52 = vld [vmem:[%s5932_s4 + $0x168] sm:$0xff]   ;;  %v1587_v45 = vld [vmem:[%s5933_s5] sm:$0xf] }
 0x121   :  { %4446 = vmatprep.subr.bf16.mxu1 %v4971_v53  ;;  %v5036_v8 = vld [vmem:[#allocation2 + $0x40] ss:$8 sps:$4 sm:$0xff]  }
 0x122   :  { %v5048_v23 = vld [vmem:[#allocation2 + $0x41] ss:$8 sps:$4 sm:$0xff]  }
 0x123   :  { %v3960_v41 = vld [vmem:[%s5933_s5 + $0x8] sm:$0xf] }
 0x124   :  { %4447 = vmatpush3.bf16.msra.mxu1 %v4971_v53  ;;  %v5022_v53 = vld [vmem:[%s5932_s4 + $0x170] sm:$0xff]   ;;  %4932 = vmatprep.subr.msk.bf16.mxu0 %vm1623_vm5, %v3960_v41  ;;  %v1769_v43 = vsel %vm1623_vm5, %v3960_v41, 0 }
 0x125   :  { %4448 = vmatprep.subr.bf16.mxu1 %v4972_v54  ;;  %4613 = vmatpush3.bf16.msra.mxu0 %v1769_v43  ;;  %v3972_v43 = vld [vmem:[%s5933_s5 + $0x18] sm:$0xf] }
 0x126   :  { %4933 = vmatprep.subr.msk.bf16.mxu0 %vm1623_vm5, %v3963_v15 }
 0x128   :  { %4449 = vmatpush3.bf16.msra.mxu1 %v4972_v54  ;;  %v5023_v54 = vld [vmem:[%s5932_s4 + $0x178] sm:$0xff]  }
 0x129   :  { %4450 = vmatprep.subr.bf16.mxu1 %v4973_v55 }
 0x12c   :  { %4451 = vmatpush3.bf16.msra.mxu1 %v4973_v55  ;;  %v5025_v55 = vld [vmem:[#allocation2 + $0x4a] ss:$8 sps:$4 sm:$0xff]  }
 0x12d   :  { %4452 = vmatprep.subr.bf16.mxu1 %v4974_v56  ;;  %v960_v60 = vpack.c.bf16 %v5025_v55, %v5024_v58 }
 0x130   :  { %4453 = vmatpush3.bf16.msra.mxu1 %v4974_v56  ;;  %v5026_v56 = vld [vmem:[%s5932_s4 + $0x180] sm:$0xff]  }
 0x131   :  { %4454 = vmatprep.subr.bf16.mxu1 %v4975_v57 }
 0x134   :  { %4455 = vmatpush3.bf16.msra.mxu1 %v4975_v57  ;;  %v5028_v57 = vld [vmem:[#allocation2 + $0x20] ss:$8 sps:$4 sm:$0xff]  }
 0x135   :  { %4460 = vmatprep.subr.bf16.mxu1 %v4978_v59 }
 0x137   :  { %4457 = vmatmul.mubr.bf16.vlgmr.msra.gmra.mrb[4].mxu1 %v249_v63  ;;  %v5030_v63 = vld [vmem:[%s5932_s4 + $0x190] sm:$0xff]  }
 0x138   :  { %4461 = vmatpush3.bf16.msra.mxu1 %v4978_v59  ;;  %4476 = vmatprep.mubr.bf16.mxu1 %v527_v1  ;;  %v5027_v59 = vld [vmem:[#allocation2 + $0x10] ss:$8 sps:$4 sm:$0xff]   ;;  %v5032_v1 = vld [vmem:[%s5932_s4 + $0x1a0] sm:$0xff]  }
 0x139   :  { %4462 = vmatprep.subr.bf16.mxu1 %v4981_v0  ;;  %v1104_v62 = vpack.c.bf16 %v5028_v57, %v5027_v59 }
 0x13c   :  { %4463 = vmatpush3.bf16.msra.mxu1 %v4981_v0  ;;  %v5031_v0 = vld [vmem:[%s5932_s4 + $0x198] sm:$0xff]  }
 0x13d   :  { %4464 = vmatprep.subr.bf16.mxu1 %v4982_v2 }
 0x140   :  { %4465 = vmatpush3.bf16.msra.mxu1 %v4982_v2  ;;  %v5033_v2 = vld [vmem:[%s5932_s4 + $0x1a8] sm:$0xff]  }
 0x141   :  { %4466 = vmatprep.subr.bf16.mxu1 %v4983_v3 }
 0x144   :  { %4467 = vmatpush3.bf16.msra.mxu1 %v4983_v3  ;;  %v5034_v3 = vld [vmem:[%s5932_s4 + $0x1b0] sm:$0xff]  }
 0x145   :  { %4468 = vmatprep.subr.bf16.mxu1 %v4984_v4 }
 0x148   :  { %4469 = vmatpush3.bf16.msra.mxu1 %v4984_v4  ;;  %v5035_v4 = vld [vmem:[%s5932_s4 + $0x1b8] sm:$0xff]  }
 0x149   :  { %4470 = vmatprep.subr.bf16.mxu1 %v4985_v5 }
 0x14c   :  { %4471 = vmatpush3.bf16.msra.mxu1 %v4985_v5  ;;  %v5037_v5 = vld [vmem:[#allocation2 + $0x50] ss:$8 sps:$4 sm:$0xff]  }
 0x14d   :  { %4472 = vmatprep.subr.bf16.mxu1 %v4986_v6  ;;  %v1105_v10 = vpack.c.bf16 %v5037_v5, %v5036_v8 }
 0x150   :  { %4473 = vmatpush3.bf16.msra.mxu1 %v4986_v6  ;;  %v5038_v6 = vld [vmem:[%s5932_s4 + $0x1c0] sm:$0xff]  }
 0x151   :  { %4474 = vmatprep.subr.bf16.mxu1 %v4987_v7 }
 0x154   :  { %4475 = vmatpush3.bf16.msra.mxu1 %v4987_v7  ;;  %v5040_v7 = vld [vmem:[#allocation2 + $0x21] ss:$8 sps:$4 sm:$0xff]  }
 0x155   :  { %4480 = vmatprep.subr.bf16.mxu1 %v4990_v9 }
 0x157   :  { %4477 = vmatmul.mubr.bf16.vlgmr.msra.gmra.mrb[4].mxu1 %v528_v13  ;;  %v5042_v13 = vld [vmem:[%s5932_s4 + $0x1d0] sm:$0xff]  }
 0x158   :  { %4481 = vmatpush3.bf16.msra.mxu1 %v4990_v9  ;;  %4496 = vmatprep.mubr.bf16.mxu1 %v671_v16  ;;  %v5039_v9 = vld [vmem:[#allocation2 + $0x11] ss:$8 sps:$4 sm:$0xff]   ;;  %v5044_v16 = vld [vmem:[%s5932_s4 + $0x1e0] sm:$0xff]  }
 0x159   :  { %4482 = vmatprep.subr.bf16.mxu1 %v4993_v14  ;;  %v1248_v12 = vpack.c.bf16 %v5040_v7, %v5039_v9 }
 0x15c   :  { %4483 = vmatpush3.bf16.msra.mxu1 %v4993_v14  ;;  %v5043_v14 = vld [vmem:[%s5932_s4 + $0x1d8] sm:$0xff]  }
 0x15d   :  { %4484 = vmatprep.subr.bf16.mxu1 %v4994_v17 }
 0x160   :  { %4485 = vmatpush3.bf16.msra.mxu1 %v4994_v17  ;;  %v5045_v17 = vld [vmem:[%s5932_s4 + $0x1e8] sm:$0xff]  }
 0x161   :  { %4486 = vmatprep.subr.bf16.mxu1 %v4995_v18 }
 0x164   :  { %4487 = vmatpush3.bf16.msra.mxu1 %v4995_v18  ;;  %v5046_v18 = vld [vmem:[%s5932_s4 + $0x1f0] sm:$0xff]  }
 0x165   :  { %4488 = vmatprep.subr.bf16.mxu1 %v4996_v19 }
 0x168   :  { %4489 = vmatpush3.bf16.msra.mxu1 %v4996_v19  ;;  %v5047_v19 = vld [vmem:[%s5932_s4 + $0x1f8] sm:$0xff]  }
 0x169   :  { %4490 = vmatprep.subr.bf16.mxu1 %v4997_v20 }
 0x16c   :  { %4491 = vmatpush3.bf16.msra.mxu1 %v4997_v20  ;;  %v5049_v20 = vld [vmem:[#allocation2 + $0x51] ss:$8 sps:$4 sm:$0xff]  }
 0x16d   :  { %4492 = vmatprep.subr.bf16.mxu1 %v4998_v21  ;;  %v1249_v25 = vpack.c.bf16 %v5049_v20, %v5048_v23 }
 0x170   :  { %4493 = vmatpush3.bf16.msra.mxu1 %v4998_v21  ;;  %v5050_v21 = vld [vmem:[%s5932_s4 + $0x200] sm:$0xff]  }
 0x171   :  { %4494 = vmatprep.subr.bf16.mxu1 %v4999_v22 }
 0x174   :  { %4495 = vmatpush3.bf16.msra.mxu1 %v4999_v22  ;;  %v5052_v22 = vld [vmem:[#allocation2 + $0x22] ss:$8 sps:$4 sm:$0xff]  }
 0x175   :  { %4500 = vmatprep.subr.bf16.mxu1 %v5002_v24 }
 0x177   :  { %4497 = vmatmul.mubr.bf16.vlgmr.msra.gmra.mrb[4].mxu1 %v672_v28  ;;  %v5054_v28 = vld [vmem:[%s5932_s4 + $0x210] sm:$0xff]  }
 0x178   :  { %4501 = vmatpush3.bf16.msra.mxu1 %v5002_v24  ;;  %4516 = vmatprep.mubr.bf16.mxu1 %v815_v30  ;;  %v5051_v24 = vld [vmem:[#allocation2 + $0x12] ss:$8 sps:$4 sm:$0xff]   ;;  %v5056_v30 = vld [vmem:[%s5932_s4 + $0x220] sm:$0xff]  }
 0x179   :  { %4502 = vmatprep.subr.bf16.mxu1 %v5005_v29  ;;  %v1392_v27 = vpack.c.bf16 %v5052_v22, %v5051_v24 }
 0x17c   :  { %4503 = vmatpush3.bf16.msra.mxu1 %v5005_v29  ;;  %v5055_v29 = vld [vmem:[%s5932_s4 + $0x218] sm:$0xff]  }
 0x17d   :  { %4504 = vmatprep.subr.bf16.mxu1 %v5006_v31 }
 0x180   :  { %4505 = vmatpush3.bf16.msra.mxu1 %v5006_v31  ;;  %v5057_v31 = vld [vmem:[%s5932_s4 + $0x228] sm:$0xff]  }
 0x181   :  { %4506 = vmatprep.subr.bf16.mxu1 %v5007_v33 }
 0x184   :  { %4507 = vmatpush3.bf16.msra.mxu1 %v5007_v33  ;;  %v5058_v33 = vld [vmem:[%s5932_s4 + $0x230] sm:$0xff]  }
 0x185   :  { %4508 = vmatprep.subr.bf16.mxu1 %v5008_v34 }
 0x188   :  { %4509 = vmatpush3.bf16.msra.mxu1 %v5008_v34  ;;  %v5059_v34 = vld [vmem:[%s5932_s4 + $0x238] sm:$0xff]  }
 0x189   :  { %4510 = vmatprep.subr.bf16.mxu1 %v5009_v36 }
 0x18c   :  { %4511 = vmatpush3.bf16.msra.mxu1 %v5009_v36  ;;  %v5061_v36 = vld [vmem:[#allocation2 + $0x52] ss:$8 sps:$4 sm:$0xff]  }
 0x18d   :  { %4512 = vmatprep.subr.bf16.mxu1 %v5010_v37 }
 0x190   :  { %4513 = vmatpush3.bf16.msra.mxu1 %v5010_v37  ;;  %v5060_v37 = vld [vmem:[#allocation2 + $0x42] ss:$8 sps:$4 sm:$0xff]  }
 0x191   :  { %4514 = vmatprep.subr.bf16.mxu1 %v5011_v39 }
 0x194   :  { %4515 = vmatpush3.bf16.msra.mxu1 %v5011_v39  ;;  %v1393_v39 = vpack.c.bf16 %v5061_v36, %v5060_v37 }
 0x195   :  { %4520 = vmatprep.subr.bf16.mxu1 %v5014_v42 }
 0x197   :  { %4517 = vmatmul.mubr.bf16.vlgmr.msra.gmra.mrb[4].mxu1 %v816_v46  ;;  %v1517_v46 = vstv %s3954_s18  ;;  %s3981_s18 = sld [smem:[#allocation5 + $0x2]] }
 0x198   :  { %4521 = vmatpush3.bf16.msra.mxu1 %v5014_v42  ;;  %4536 = vmatprep.mubr.bf16.mxu1 %v959_v48  ;;  %v3955_v42 = vld [vmem:[%s5933_s5 + $0x4] sm:$0xf] }
 0x199   :  { %4522 = vmatprep.subr.bf16.mxu1 %v5017_v47  ;;  %v1625_v44 = vsel %vm1623_vm5, %v3955_v42, 0 }
 0x19c   :  { %4523 = vmatpush3.bf16.msra.mxu1 %v5017_v47 }
 0x19d   :  { %4524 = vmatprep.subr.bf16.mxu1 %v5018_v49 }
 0x1a0   :  { %4525 = vmatpush3.bf16.msra.mxu1 %v5018_v49 }
 0x1a1   :  { %4526 = vmatprep.subr.bf16.mxu1 %v5019_v50 }
 0x1a4   :  { %4527 = vmatpush3.bf16.msra.mxu1 %v5019_v50 }
 0x1a5   :  { %4528 = vmatprep.subr.bf16.mxu1 %v5020_v51 }
 0x1a8   :  { %4529 = vmatpush3.bf16.msra.mxu1 %v5020_v51 }
 0x1a9   :  { %4530 = vmatprep.subr.bf16.mxu1 %v5021_v52 }
 0x1ac   :  { %4531 = vmatpush3.bf16.msra.mxu1 %v5021_v52 }
 0x1ad   :  { %4532 = vmatprep.subr.bf16.mxu1 %v5022_v53 }
 0x1b0   :  { %4533 = vmatpush3.bf16.msra.mxu1 %v5022_v53 }
 0x1b1   :  { %4534 = vmatprep.subr.bf16.mxu1 %v5023_v54 }
 0x1b4   :  { %4535 = vmatpush3.bf16.msra.mxu1 %v5023_v54 }
 0x1b5   :  { %4540 = vmatprep.subr.bf16.mxu1 %v5026_v56 }
 0x1b7   :  { %4537 = vmatmul.mubr.bf16.vlgmr.msra.gmra.mrb[4].mxu1 %v960_v60 }
 0x1b8   :  { %4541 = vmatpush3.bf16.msra.mxu1 %v5026_v56  ;;  %4556 = vmatprep.mubr.bf16.mxu1 %v1104_v62 }
 0x1b9   :  { %4542 = vmatprep.subr.bf16.mxu1 %v5029_v61 }
 0x1bc   :  { %4543 = vmatpush3.bf16.msra.mxu1 %v5029_v61 }
 0x1bd   :  { %4544 = vmatprep.subr.bf16.mxu1 %v5030_v63 }
 0x1c0   :  { %4545 = vmatpush3.bf16.msra.mxu1 %v5030_v63  ;;  %v1859_v63 = vsel %vm1623_vm5, %v3963_v15, 0 }
 0x1c1   :  { %4546 = vmatprep.subr.bf16.mxu1 %v5031_v0 }
 0x1c4   :  { %4547 = vmatpush3.bf16.msra.mxu1 %v5031_v0  ;;  %v1683_v0 = vsel %vm1623_vm5, %v1587_v45, 0 }
 0x1c5   :  { %4548 = vmatprep.subr.bf16.mxu1 %v5032_v1 }
 0x1c8   :  { %4549 = vmatpush3.bf16.msra.mxu1 %v5032_v1 }
 0x1c9   :  { %4550 = vmatprep.subr.bf16.mxu1 %v5033_v2 }
 0x1cc   :  { %4551 = vmatpush3.bf16.msra.mxu1 %v5033_v2 }
 0x1cd   :  { %4552 = vmatprep.subr.bf16.mxu1 %v5034_v3 }
 0x1d0   :  { %4553 = vmatpush3.bf16.msra.mxu1 %v5034_v3 }
 0x1d1   :  { %4554 = vmatprep.subr.bf16.mxu1 %v5035_v4 }
 0x1d4   :  { %4555 = vmatpush3.bf16.msra.mxu1 %v5035_v4 }
 0x1d5   :  { %4560 = vmatprep.subr.bf16.mxu1 %v5038_v6 }
 0x1d7   :  { %4557 = vmatmul.mubr.bf16.vlgmr.msra.gmra.mrb[4].mxu1 %v1105_v10 }
 0x1d8   :  { %4561 = vmatpush3.bf16.msra.mxu1 %v5038_v6  ;;  %4576 = vmatprep.mubr.bf16.mxu1 %v1248_v12 }
 0x1d9   :  { %4562 = vmatprep.subr.bf16.mxu1 %v5041_v11 }
 0x1dc   :  { %4563 = vmatpush3.bf16.msra.mxu1 %v5041_v11 }
 0x1dd   :  { %4564 = vmatprep.subr.bf16.mxu1 %v5042_v13 }
 0x1e0   :  { %4565 = vmatpush3.bf16.msra.mxu1 %v5042_v13  ;;  %v3966_v13 = vld [vmem:[%s5933_s5 + $0x10] sm:$0xf] }
 0x1e1   :  { %4566 = vmatprep.subr.bf16.mxu1 %v5043_v14 }
 0x1e4   :  { %4567 = vmatpush3.bf16.msra.mxu1 %v5043_v14 }
 0x1e5   :  { %4568 = vmatprep.subr.bf16.mxu1 %v5044_v16 }
 0x1e8   :  { %4569 = vmatpush3.bf16.msra.mxu1 %v5044_v16 }
 0x1e9   :  { %4570 = vmatprep.subr.bf16.mxu1 %v5045_v17 }
 0x1ec   :  { %4571 = vmatpush3.bf16.msra.mxu1 %v5045_v17 }
 0x1ed   :  { %4572 = vmatprep.subr.bf16.mxu1 %v5046_v18 }
 0x1f0   :  { %4573 = vmatpush3.bf16.msra.mxu1 %v5046_v18 }
 0x1f1   :  { %4574 = vmatprep.subr.bf16.mxu1 %v5047_v19 }
 0x1f4   :  { %4575 = vmatpush3.bf16.msra.mxu1 %v5047_v19 }
 0x1f5   :  { %4580 = vmatprep.subr.bf16.mxu1 %v5050_v21 }
 0x1f7   :  { %4577 = vmatmul.mubr.bf16.vlgmr.msra.gmra.mrb[4].mxu1 %v1249_v25 }
 0x1f8   :  { %4581 = vmatpush3.bf16.msra.mxu1 %v5050_v21  ;;  %4596 = vmatprep.mubr.bf16.mxu1 %v1392_v27  ;;  %v1949_v27 = vsel %vm1623_vm5, %v3966_v13, 0 }
 0x1f9   :  { %4582 = vmatprep.subr.bf16.mxu1 %v5053_v26 }
 0x1fc   :  { %4583 = vmatpush3.bf16.msra.mxu1 %v5053_v26 }
 0x1fd   :  { %4584 = vmatprep.subr.bf16.mxu1 %v5054_v28 }
 0x200   :  { %4585 = vmatpush3.bf16.msra.mxu1 %v5054_v28 }
 0x201   :  { %4586 = vmatprep.subr.bf16.mxu1 %v5055_v29 }
 0x204   :  { %4587 = vmatpush3.bf16.msra.mxu1 %v5055_v29 }
 0x205   :  { %4588 = vmatprep.subr.bf16.mxu1 %v5056_v30 }
 0x208   :  { %4589 = vmatpush3.bf16.msra.mxu1 %v5056_v30 }
 0x209   :  { %4590 = vmatprep.subr.bf16.mxu1 %v5057_v31 }
 0x20c   :  { %4591 = vmatpush3.bf16.msra.mxu1 %v5057_v31  ;;  %v3969_v31 = vld [vmem:[%s5933_s5 + $0x14] sm:$0xf] }
 0x20d   :  { %4592 = vmatprep.subr.bf16.mxu1 %v5058_v33  ;;  %v2039_v41 = vsel %vm1623_vm5, %v3969_v31, 0 }
 0x210   :  { %4593 = vmatpush3.bf16.msra.mxu1 %v5058_v33 }
 0x211   :  { %4594 = vmatprep.subr.bf16.mxu1 %v5059_v34 }
 0x214   :  { %4595 = vmatpush3.bf16.msra.mxu1 %v5059_v34 }
 0x215   :  { %4930 = vmatprep.subr.msk.bf16.mxu1 %vm1623_vm5, %v3955_v42 }
 0x217   :  { %4597 = vmatmul.mubr.bf16.vlgmr.msra.gmra.mrb[4].mxu1 %v1393_v39 }
 0x218   :  { %4601 = vmatpush3.bf16.msra.mxu1 %v1625_v44 }
 0x219   :  { %4931 = vmatprep.subr.msk.bf16.mxu1 %vm1623_vm5, %v1587_v45 }
 0x2ea   :  { %v4598_v47 = vpop.f32.mrb[4].mxu1 }
 0x2eb   :  { %vm1515_vm6 = vcmp.ge.f32.partialorder %v4598_v47, 0.0  ;;  %v1520_v48 = vmul.f32 %v4598_v47, %v1517_v46  ;;  %v1493_v49 = vpop.f32.mrb[5].mxu1 }
 0x2ec   :  { %vm1513_vm8 = vcmp.ge.f32.partialorder %v1493_v49, 0.0  ;;  %v1518_v50 = vmul.f32 %v1517_v46, %v1493_v49  ;;  %v4599_v51 = vpop.f32.mrb[6].mxu1 }
 0x2ed   :  { %v5615_v52 = vsel %vm1515_vm6, %v4598_v47, %v1520_v48  ;;  %vm1516_vm9 = vcmp.ge.f32.partialorder %v4599_v51, 0.0  ;;  %v1521_v53 = vmul.f32 %v4599_v51, %v1517_v46  ;;  %v1496_v54 = vpop.f32.mrb[7].mxu1  ;;  %v2130_v48 = vsel %vm1623_vm5, %v3972_v43, 0 }
 0x2ee   :  { %v1545_v55 = vcombine.high %v5615_v52, %v5615_v52  ;;  %1557 = vst.msk [vmem:[#allocation3 + $0x39] sm:$0xf] %vm1552_vm7, %v5615_v52  ;;  %v5621_v56 = vsel %vm1513_vm8, %v1493_v49, %v1518_v50  ;;  %vm1514_vm10 = vcmp.ge.f32.partialorder %v1496_v54, 0.0  ;;  %v1519_v57 = vmul.f32 %v1517_v46, %v1496_v54  ;;  %v3975_v50 = vld [vmem:[%s5933_s5 + $0x1c] sm:$0xf] }
 0x2ef   :  { %v1543_v58 = vcombine.high %v5621_v56, %v5621_v56  ;;  %1553 = vst.msk [vmem:[#allocation3 + $0x9] sm:$0xf] %vm1552_vm7, %v5621_v56  ;;  %v5627_v59 = vsel %vm1516_vm9, %v4599_v51, %v1521_v53 }
 0x2f0   :  { %1558 = vst.msk [vmem:[#allocation3 + $0x41] sm:$0xf] %vm1552_vm7, %v1545_v55  ;;  %v1546_v60 = vcombine.high %v5627_v59, %v5627_v59  ;;  %1559 = vst.msk [vmem:[#allocation3 + $0x49] sm:$0xf] %vm1552_vm7, %v5627_v59  ;;  %v5634_v61 = vsel %vm1514_vm10, %v1496_v54, %v1519_v57 }
 0x2f1   :  { %1554 = vst.msk [vmem:[#allocation3 + $0x11] sm:$0xf] %vm1552_vm7, %v1543_v58  ;;  %v1544_v62 = vcombine.high %v5634_v61, %v5634_v61  ;;  %1555 = vst.msk [vmem:[#allocation3 + $0x19] sm:$0xf] %vm1552_vm7, %v5634_v61  ;;  %v2220_v58 = vsel %vm1623_vm5, %v3975_v50, 0 }
 0x2f2   :  { %1560 = vst.msk [vmem:[#allocation3 + $0x51] sm:$0xf] %vm1552_vm7, %v1546_v60 }
 0x2f3   :  { %1556 = vst.msk [vmem:[#allocation3 + $0x21] sm:$0xf] %vm1552_vm7, %v1544_v62  ;;  %v3978_v62 = vld [vmem:[%s5933_s5 + $0x20] sm:$0xf]  ;;  %s4182_s5 = sld [smem:[#allocation5 + $0x3]] }
 0x2f5   :  { %v5066_v4 = vld [vmem:[#allocation3 + $0x31] ss:$8 sps:$4 sm:$0xff]  }
 0x2f6   :  { %v5062_v1 = vld [vmem:[#allocation3 + $0x1] ss:$8 sps:$4 sm:$0xff]   ;;  %v5068_v9 = vld [vmem:[#allocation3 + $0x32] ss:$8 sps:$4 sm:$0xff]  }
 0x2f7   :  { %v5064_v2 = vld [vmem:[#allocation3 + $0x2] ss:$8 sps:$4 sm:$0xff]   ;;  %v5074_v21 = vld [vmem:[#allocation3 + $0x30] ss:$8 sps:$4 sm:$0xff]  }
 0x2f8   :  { %v5063_v3 = vld [vmem:[#allocation3 + $0x11] ss:$8 sps:$4 sm:$0xff]   ;;  %v5067_v7 = vld [vmem:[#allocation3 + $0x41] ss:$8 sps:$4 sm:$0xff]  }
 0x2f9   :  { %v5065_v5 = vld [vmem:[#allocation3 + $0x12] ss:$8 sps:$4 sm:$0xff]   ;;  %v1612_v6 = vpack.c.bf16 %v5063_v3, %v5062_v1  ;;  %v5069_v10 = vld [vmem:[#allocation3 + $0x42] ss:$8 sps:$4 sm:$0xff]   ;;  %v1613_v11 = vpack.c.bf16 %v5067_v7, %v5066_v4  ;;  %v2310_v4 = vsel %vm1623_vm5, %v3978_v62, 0 }
 0x2fa   :  { %v1758_v8 = vpack.c.bf16 %v5065_v5, %v5064_v2  ;;  %v5070_v12 = vld [vmem:[#allocation3] ss:$8 sps:$4 sm:$0xff]   ;;  %v1759_v14 = vpack.c.bf16 %v5069_v10, %v5068_v9  ;;  %v5071_v16 = vld [vmem:[#allocation3 + $0x10] ss:$8 sps:$4 sm:$0xff]  }
 0x2fb   :  { %4602 = vmatprep.mubr.msk.bf16.mxu1 %vm1616_vm11, %v1612_v6  ;;  %v5072_v17 = vld [vmem:[#allocation3 + $0x8] ss:$8 sps:$4 sm:$0xff]   ;;  %v1585_v18 = vpack.c.bf16 %v5071_v16, %v5070_v12  ;;  %v5073_v19 = vld [vmem:[#allocation3 + $0x18] ss:$8 sps:$4 sm:$0xff]  }
 0x2fc   :  { %4614 = vmatprep.mubr.msk.bf16.mxu0 %vm1616_vm11, %v1758_v8  ;;  %4603 = vmatmul.mubr.msk.bf16.vlgmr.msra.gmra.mrb[8].mxu1 %vm1616_vm11, %v1613_v11  ;;  %v1848_v20 = vpack.c.bf16 %v5073_v19, %v5072_v17  ;;  %v5075_v22 = vld [vmem:[#allocation3 + $0x40] ss:$8 sps:$4 sm:$0xff]   ;;  %v5086_v46 = vld [vmem:[#allocation3 + $0x10] ss:$8 sps:$4 sm:$0xff]  }
 0x2fd   :  { %4615 = vmatmul.mubr.msk.bf16.vlgmr.msra.gmra.mrb[0].mxu0 %vm1616_vm11, %v1759_v14  ;;  %4607 = vmatpush3.bf16.msra.mxu1 %v1683_v0  ;;  %v5077_v23 = vld [vmem:[#allocation3 + $0x48] ss:$8 sps:$4 sm:$0xff]   ;;  %v5076_v24 = vld [vmem:[#allocation3 + $0x38] ss:$8 sps:$4 sm:$0xff]   ;;  %v1586_v26 = vpack.c.bf16 %v5075_v22, %v5074_v21 }
 0x2fe   :  { %4619 = vmatpush3.bf16.msra.mxu0 %v1859_v63  ;;  %4608 = vmatprep.mubr.msk.bf16.mxu1 %vm1616_vm11, %v1585_v18  ;;  %v5079_v25 = vld [vmem:[#allocation3 + $0x19] ss:$8 sps:$4 sm:$0xff]   ;;  %v5078_v28 = vld [vmem:[#allocation3 + $0x9] ss:$8 sps:$4 sm:$0xff]   ;;  %v1849_v29 = vpack.c.bf16 %v5077_v23, %v5076_v24  ;;  %v2370_v24 = vstv %s3981_s18 }
 0x2ff   :  { %4934 = vmatprep.subr.msk.bf16.mxu0 %vm1623_vm5, %v3966_v13  ;;  %4620 = vmatprep.mubr.msk.bf16.mxu0 %vm1616_vm11, %v1848_v20  ;;  %v1938_v30 = vpack.c.bf16 %v5079_v25, %v5078_v28  ;;  %v5081_v33 = vld [vmem:[#allocation3 + $0x49] ss:$8 sps:$4 sm:$0xff]   ;;  %v5083_v34 = vld [vmem:[#allocation3 + $0x1a] ss:$8 sps:$4 sm:$0xff]  }
 0x300   :  { %v5080_v36 = vld [vmem:[#allocation3 + $0x39] ss:$8 sps:$4 sm:$0xff]   ;;  %v5082_v37 = vld [vmem:[#allocation3 + $0xa] ss:$8 sps:$4 sm:$0xff]  }
 0x301   :  { %v1939_v39 = vpack.c.bf16 %v5081_v33, %v5080_v36  ;;  %v2028_v42 = vpack.c.bf16 %v5083_v34, %v5082_v37  ;;  %v5085_v44 = vld [vmem:[#allocation3 + $0x4a] ss:$8 sps:$4 sm:$0xff]   ;;  %v5084_v45 = vld [vmem:[#allocation3 + $0x3a] ss:$8 sps:$4 sm:$0xff]  }
 0x302   :  { %v5087_v15 = vld [vmem:[#allocation3 + $0x20] ss:$8 sps:$4 sm:$0xff]   ;;  %v2029_v47 = vpack.c.bf16 %v5085_v44, %v5084_v45  ;;  %v5089_v51 = vld [vmem:[#allocation3 + $0x50] ss:$8 sps:$4 sm:$0xff]  }
 0x303   :  { %v2119_v49 = vpack.c.bf16 %v5087_v15, %v5086_v46  ;;  %v5091_v53 = vld [vmem:[#allocation3 + $0x21] ss:$8 sps:$4 sm:$0xff]   ;;  %v5090_v55 = vld [vmem:[#allocation3 + $0x11] ss:$8 sps:$4 sm:$0xff]  }
 0x304   :  { %v5088_v54 = vld [vmem:[#allocation3 + $0x40] ss:$8 sps:$4 sm:$0xff]   ;;  %v2209_v60 = vpack.c.bf16 %v5091_v53, %v5090_v55  ;;  %v5093_v63 = vld [vmem:[#allocation3 + $0x51] ss:$8 sps:$4 sm:$0xff]  }
 0x305   :  { %v2120_v57 = vpack.c.bf16 %v5089_v51, %v5088_v54  ;;  %v5095_v0 = vld [vmem:[#allocation3 + $0x22] ss:$8 sps:$4 sm:$0xff]   ;;  %v5094_v2 = vld [vmem:[#allocation3 + $0x12] ss:$8 sps:$4 sm:$0xff]  }
 0x306   :  { %v5092_v1 = vld [vmem:[#allocation3 + $0x41] ss:$8 sps:$4 sm:$0xff]   ;;  %v2299_v5 = vpack.c.bf16 %v5095_v0, %v5094_v2  ;;  %v5097_v6 = vld [vmem:[#allocation3 + $0x52] ss:$8 sps:$4 sm:$0xff]  }
 0x307   :  { %v2210_v3 = vpack.c.bf16 %v5093_v63, %v5092_v1  ;;  %v5096_v7 = vld [vmem:[#allocation3 + $0x42] ss:$8 sps:$4 sm:$0xff]   ;;  %v5100_v11 = vld [vmem:[%s5934_s6 + $0x50] sm:$0xff]   ;;  %v5101_v12 = vld [vmem:[%s5934_s6 + $0x58] sm:$0xff]  }
 0x308   :  { %4609 = vmatmul.mubr.msk.bf16.vlgmr.msra.gmra.mrb[8].mxu1 %vm1616_vm11, %v1586_v26  ;;  %v2300_v8 = vpack.c.bf16 %v5097_v6, %v5096_v7  ;;  %v5098_v9 = vld [vmem:[%s5934_s6 + $0x40] sm:$0xff]   ;;  %v5099_v10 = vld [vmem:[%s5934_s6 + $0x48] sm:$0xff]   ;;  %v5104_v16 = vld [vmem:[%s5934_s6 + $0x70] sm:$0xff]  }
 0x309   :  { %4621 = vmatmul.mubr.msk.bf16.vlgmr.msra.gmra.mrb[0].mxu0 %vm1616_vm11, %v1849_v29  ;;  %v5102_v13 = vld [vmem:[%s5934_s6 + $0x60] sm:$0xff]   ;;  %v5103_v14 = vld [vmem:[%s5934_s6 + $0x68] sm:$0xff]   ;;  %v5105_v17 = vld [vmem:[%s5934_s6 + $0x78] sm:$0xff]  }
 0x30a   :  { %4625 = vmatpush3.bf16.msra.mxu0 %v1949_v27  ;;  %4626 = vmatprep.mubr.msk.bf16.mxu0 %vm1616_vm11, %v1938_v30  ;;  %v5108_v18 = vld [vmem:[%s5934_s6] sm:$0xff]   ;;  %v5117_v0 = vld [vmem:[%s5934_s6 + $0x28] sm:$0xff]   ;;  %v5118_v1 = vld [vmem:[%s5934_s6 + $0x30] sm:$0xff]  }
 0x30b   :  { %4935 = vmatprep.subr.msk.bf16.mxu0 %vm1623_vm5, %v3969_v31  ;;  %v5116_v63 = vld [vmem:[%s5934_s6 + $0x20] sm:$0xff]   ;;  %v5119_v2 = vld [vmem:[%s5934_s6 + $0x38] sm:$0xff]  }
 0x315   :  { %4627 = vmatmul.mubr.msk.bf16.vlgmr.msra.gmra.mrb[0].mxu0 %vm1616_vm11, %v1939_v39 }
 0x316   :  { %4631 = vmatpush3.bf16.msra.mxu0 %v2039_v41  ;;  %4632 = vmatprep.mubr.msk.bf16.mxu0 %vm1616_vm11, %v2028_v42 }
 0x317   :  { %4936 = vmatprep.subr.msk.bf16.mxu0 %vm1623_vm5, %v3972_v43 }
 0x321   :  { %4633 = vmatmul.mubr.msk.bf16.vlgmr.msra.gmra.mrb[0].mxu0 %vm1616_vm11, %v2029_v47 }
 0x322   :  { %4637 = vmatpush3.bf16.msra.mxu0 %v2130_v48  ;;  %4638 = vmatprep.mubr.msk.bf16.mxu0 %vm1616_vm11, %v2119_v49 }
 0x323   :  { %4937 = vmatprep.subr.msk.bf16.mxu0 %vm1623_vm5, %v3975_v50 }
 0x32d   :  { %4639 = vmatmul.mubr.msk.bf16.vlgmr.msra.gmra.mrb[0].mxu0 %vm1616_vm11, %v2120_v57 }
 0x32e   :  { %4643 = vmatpush3.bf16.msra.mxu0 %v2220_v58  ;;  %4644 = vmatprep.mubr.msk.bf16.mxu0 %vm1616_vm11, %v2209_v60  ;;  %v5114_v60 = vld [vmem:[%s5934_s6 + $0x10] sm:$0xff]  }
 0x32f   :  { %4938 = vmatprep.subr.msk.bf16.mxu0 %vm1623_vm5, %v3978_v62  ;;  %v5115_v62 = vld [vmem:[%s5934_s6 + $0x18] sm:$0xff]  }
 0x339   :  { %4645 = vmatmul.mubr.msk.bf16.vlgmr.msra.gmra.mrb[0].mxu0 %vm1616_vm11, %v2210_v3 }
 0x33a   :  { %4649 = vmatpush3.bf16.msra.mxu0 %v2310_v4  ;;  %4650 = vmatprep.mubr.msk.bf16.mxu0 %vm1616_vm11, %v2299_v5  ;;  %v5122_v4 = vld [vmem:[%s5934_s6 + $0x80] sm:$0xff]  }
 0x33b   :  { %4654 = vmatprep.subr.bf16.mxu0 %v5098_v9 }
 0x345   :  { %4651 = vmatmul.mubr.msk.bf16.vlgmr.msra.gmra.mrb[0].mxu0 %vm1616_vm11, %v2300_v8 }
 0x346   :  { %4655 = vmatpush3.bf16.msra.mxu0 %v5098_v9  ;;  %v5125_v9 = vld [vmem:[%s5934_s6 + $0x88] sm:$0xff]  }
 0x347   :  { %4656 = vmatprep.subr.bf16.mxu0 %v5099_v10 }
 0x34a   :  { %4657 = vmatpush3.bf16.msra.mxu0 %v5099_v10 }
 0x34b   :  { %4658 = vmatprep.subr.bf16.mxu0 %v5100_v11 }
 0x34e   :  { %4659 = vmatpush3.bf16.msra.mxu0 %v5100_v11  ;;  %v5126_v11 = vld [vmem:[%s5934_s6 + $0x90] sm:$0xff]  }
 0x34f   :  { %4660 = vmatprep.subr.bf16.mxu0 %v5101_v12 }
 0x352   :  { %4661 = vmatpush3.bf16.msra.mxu0 %v5101_v12  ;;  %v5127_v12 = vld [vmem:[%s5934_s6 + $0x98] sm:$0xff]  }
 0x353   :  { %4662 = vmatprep.subr.bf16.mxu0 %v5102_v13 }
 0x356   :  { %4663 = vmatpush3.bf16.msra.mxu0 %v5102_v13  ;;  %v5128_v13 = vld [vmem:[%s5934_s6 + $0xa0] sm:$0xff]  }
 0x357   :  { %4664 = vmatprep.subr.bf16.mxu0 %v5103_v14 }
 0x35a   :  { %4665 = vmatpush3.bf16.msra.mxu0 %v5103_v14  ;;  %v5129_v14 = vld [vmem:[%s5934_s6 + $0xa8] sm:$0xff]  }
 0x35b   :  { %4666 = vmatprep.subr.bf16.mxu0 %v5104_v16 }
 0x35e   :  { %4667 = vmatpush3.bf16.msra.mxu0 %v5104_v16  ;;  %v5130_v16 = vld [vmem:[%s5934_s6 + $0xb0] sm:$0xff]  }
 0x35f   :  { %4668 = vmatprep.subr.bf16.mxu0 %v5105_v17 }
 0x362   :  { %4669 = vmatpush3.bf16.msra.mxu0 %v5105_v17  ;;  %v5131_v17 = vld [vmem:[%s5934_s6 + $0xb8] sm:$0xff]  }
 0x363   :  { %4674 = vmatprep.subr.bf16.mxu0 %v5108_v18 }
 0x3db   :  { %v4610_v19 = vpop.f32.mrb[8].mxu1 }
 0x3dc   :  { %v1719_v20 = vpop.f32.mrb[9].mxu1 }
 0x3dd   :  { %v4611_v21 = vpop.f32.mrb[10].mxu1 }
 0x3de   :  { %v1722_v22 = vpop.f32.mrb[11].mxu1 }
 0x418   :  { %v4652_v23 = vpop.f32.mrb[0].mxu0 }
 0x419   :  { %v4834_v25 = vadd.f32 %v4652_v23, %v4610_v19  ;;  %v2346_v26 = vpop.f32.mrb[1].mxu0  ;;  %v5134_v19 = vld [vmem:[%s5934_s6 + $0xc0] sm:$0xff]  }
 0x41a   :  { %v4835_v27 = vadd.f32 %v2346_v26, %v1719_v20  ;;  %v4653_v28 = vpop.f32.mrb[2].mxu0  ;;  %v5138_v26 = vld [vmem:[%s5934_s6 + $0xd0] sm:$0xff]  }
 0x41b   :  { %vm2368_vm12 = vcmp.ge.f32.partialorder %v4834_v25, 0.0  ;;  %v2373_v29 = vmul.f32 %v4834_v25, %v2370_v24  ;;  %v4836_v30 = vadd.f32 %v4653_v28, %v4611_v21  ;;  %v2349_v31 = vpop.f32.mrb[3].mxu0  ;;  %v5140_v28 = vld [vmem:[%s5934_s6 + $0xe0] sm:$0xff]  }
 0x41c   :  { %vm2366_vm13 = vcmp.ge.f32.partialorder %v4835_v27, 0.0  ;;  %v2371_v33 = vmul.f32 %v4835_v27, %v2370_v24  ;;  %v4837_v34 = vadd.f32 %v2349_v31, %v1722_v22  ;;  %v5143_v31 = vld [vmem:[%s5934_s6 + $0xf8] sm:$0xff]  }
 0x41d   :  { %v2377_v36 = vsel %vm2368_vm12, %v4834_v25, %v2373_v29  ;;  %vm2369_vm14 = vcmp.ge.f32.partialorder %v4836_v30, 0.0  ;;  %v2374_v37 = vmul.f32 %v4836_v30, %v2370_v24  ;;  %v5141_v29 = vld [vmem:[%s5934_s6 + $0xe8] sm:$0xff]  }
 0x41e   :  { %v2381_v39 = vsub.f32 %v2377_v36, %v5376_v32  ;;  %v2375_v41 = vsel %vm2366_vm13, %v4835_v27, %v2371_v33  ;;  %vm2367_vm15 = vcmp.ge.f32.partialorder %v4837_v34, 0.0  ;;  %v2372_v42 = vmul.f32 %v4837_v34, %v2370_v24  ;;  %v5137_v24 = vld [vmem:[%s5934_s6 + $0xc8] sm:$0xff]   ;;  %v5139_v27 = vld [vmem:[%s5934_s6 + $0xd8] sm:$0xff]  }
 0x41f   :  { %v2379_v43 = vsub.f32 %v2375_v41, %v5381_v35  ;;  %v2378_v44 = vsel %vm2369_vm14, %v4836_v30, %v2374_v37  ;;  %v5142_v30 = vld [vmem:[%s5934_s6 + $0xf0] sm:$0xff]  }
 0x420   :  { %v2401_v15 = vcombine.high %v2381_v39, %v2381_v39  ;;  %2412 = vst [vmem:[#allocation4 + $0x39] sm:$0xf] %v2381_v39  ;;  %v2382_v45 = vsub.f32 %v2378_v44, %v5386_v38  ;;  %v2376_v46 = vsel %vm2367_vm15, %v4837_v34, %v2372_v42  ;;  %v5146_v34 = vld [vmem:[%s5934_s6 + $0x100] sm:$0xff]   ;;  %v5149_v42 = vld [vmem:[%s5934_s6 + $0x108] sm:$0xff]   ;;  %v5150_v44 = vld [vmem:[%s5934_s6 + $0x110] sm:$0xff]  }
 0x421   :  { %v2399_v47 = vcombine.high %v2379_v43, %v2379_v43  ;;  %2408 = vst [vmem:[#allocation4 + $0x9] sm:$0xf] %v2379_v43  ;;  %v2380_v48 = vsub.f32 %v2376_v46, %v5391_v40  ;;  %v5113_v40 = vld [vmem:[%s5934_s6 + $0x8] sm:$0xff]  }
 0x422   :  { %2413 = vst [vmem:[#allocation4 + $0x41] sm:$0xf] %v2401_v15  ;;  %v2402_v49 = vcombine.high %v2382_v45, %v2382_v45  ;;  %2414 = vst [vmem:[#allocation4 + $0x49] sm:$0xf] %v2382_v45  ;;  %v5151_v15 = vld [vmem:[%s5934_s6 + $0x118] sm:$0xff]   ;;  %v5152_v45 = vld [vmem:[%s5934_s6 + $0x120] sm:$0xff]  }
 0x423   :  { %2409 = vst [vmem:[#allocation4 + $0x11] sm:$0xf] %v2399_v47  ;;  %v2400_v32 = vcombine.high %v2380_v48, %v2380_v48  ;;  %2410 = vst [vmem:[#allocation4 + $0x19] sm:$0xf] %v2380_v48  ;;  %v5153_v46 = vld [vmem:[%s5934_s6 + $0x128] sm:$0xff]   ;;  %v5154_v47 = vld [vmem:[%s5934_s6 + $0x130] sm:$0xff]  }
 0x424   :  { %2415 = vst [vmem:[#allocation4 + $0x51] sm:$0xf] %v2402_v49  ;;  %v5155_v48 = vld [vmem:[%s5934_s6 + $0x138] sm:$0xff]  }
 0x425   :  { %2411 = vst [vmem:[#allocation4 + $0x21] sm:$0xf] %v2400_v32  ;;  %v5158_v32 = vld [vmem:[%s5934_s6 + $0x140] sm:$0xff]  }
 0x427   :  { %v5109_v35 = vld [vmem:[#allocation4 + $0x31] ss:$8 sps:$4 sm:$0xff]  }
 0x428   :  { %v5106_v50 = vld [vmem:[#allocation4 + $0x1] ss:$8 sps:$4 sm:$0xff]   ;;  %v5120_v6 = vld [vmem:[#allocation4 + $0x30] ss:$8 sps:$4 sm:$0xff]  }
 0x429   :  { %v5110_v51 = vld [vmem:[#allocation4 + $0x41] ss:$8 sps:$4 sm:$0xff]   ;;  %v5132_v21 = vld [vmem:[#allocation4 + $0x32] ss:$8 sps:$4 sm:$0xff]  }
 0x42a   :  { %v5107_v53 = vld [vmem:[#allocation4 + $0x11] ss:$8 sps:$4 sm:$0xff]   ;;  %v5111_v54 = vld [vmem:[#allocation4] ss:$8 sps:$4 sm:$0xff]   ;;  %v2483_v57 = vpack.c.bf16 %v5110_v51, %v5109_v35 }
 0x42b   :  { %v2482_v55 = vpack.c.bf16 %v5107_v53, %v5106_v50  ;;  %v5112_v38 = vld [vmem:[#allocation4 + $0x10] ss:$8 sps:$4 sm:$0xff]   ;;  %v5121_v3 = vld [vmem:[#allocation4 + $0x40] ss:$8 sps:$4 sm:$0xff]  }
 0x42c   :  { %v2440_v58 = vpack.c.bf16 %v5112_v38, %v5111_v54  ;;  %v5124_v5 = vld [vmem:[#allocation4 + $0x12] ss:$8 sps:$4 sm:$0xff]   ;;  %v5123_v7 = vld [vmem:[#allocation4 + $0x2] ss:$8 sps:$4 sm:$0xff]   ;;  %v2441_v8 = vpack.c.bf16 %v5121_v3, %v5120_v6 }
 0x42d   :  { %4670 = vmatprep.mubr.bf16.mxu0 %v2482_v55  ;;  %v2719_v10 = vpack.c.bf16 %v5124_v5, %v5123_v7  ;;  %v5136_v20 = vld [vmem:[#allocation4 + $0x18] ss:$8 sps:$4 sm:$0xff]   ;;  %v5135_v22 = vld [vmem:[#allocation4 + $0x8] ss:$8 sps:$4 sm:$0xff]  }
 0x42e   :  { %4671 = vmatmul.mubr.bf16.vlgmr.msra.gmra.mrb[4].mxu0 %v2483_v57  ;;  %v2863_v25 = vpack.c.bf16 %v5136_v20, %v5135_v22  ;;  %v5145_v33 = vld [vmem:[#allocation4 + $0x48] ss:$8 sps:$4 sm:$0xff]   ;;  %v5148_v36 = vld [vmem:[#allocation4 + $0x19] ss:$8 sps:$4 sm:$0xff]  }
 0x42f   :  { %4675 = vmatpush3.bf16.msra.mxu0 %v5108_v18  ;;  %4690 = vmatprep.mubr.bf16.mxu0 %v2440_v58  ;;  %v5133_v18 = vld [vmem:[#allocation4 + $0x42] ss:$8 sps:$4 sm:$0xff]   ;;  %v5162_v38 = vld [vmem:[%s5934_s6 + $0x150] sm:$0xff]   ;;  %v5163_v57 = vld [vmem:[%s5934_s6 + $0x158] sm:$0xff]  }
 0x430   :  { %4676 = vmatprep.subr.bf16.mxu0 %v5113_v40  ;;  %v2720_v23 = vpack.c.bf16 %v5133_v18, %v5132_v21  ;;  %v5144_v37 = vld [vmem:[#allocation4 + $0x38] ss:$8 sps:$4 sm:$0xff]   ;;  %v5147_v39 = vld [vmem:[#allocation4 + $0x9] ss:$8 sps:$4 sm:$0xff]  }
 0x431   :  { %v2864_v41 = vpack.c.bf16 %v5145_v33, %v5144_v37  ;;  %v3007_v43 = vpack.c.bf16 %v5148_v36, %v5147_v39  ;;  %v5157_v49 = vld [vmem:[#allocation4 + $0x49] ss:$8 sps:$4 sm:$0xff]   ;;  %v5160_v50 = vld [vmem:[#allocation4 + $0x1a] ss:$8 sps:$4 sm:$0xff]  }
 0x432   :  { %v5156_v35 = vld [vmem:[#allocation4 + $0x39] ss:$8 sps:$4 sm:$0xff]   ;;  %v5159_v51 = vld [vmem:[#allocation4 + $0xa] ss:$8 sps:$4 sm:$0xff]  }
 0x433   :  { %4677 = vmatpush3.bf16.msra.mxu0 %v5113_v40  ;;  %v3008_v53 = vpack.c.bf16 %v5157_v49, %v5156_v35  ;;  %v5161_v54 = vld [vmem:[%s5934_s6 + $0x148] sm:$0xff]   ;;  %v3151_v55 = vpack.c.bf16 %v5160_v50, %v5159_v51  ;;  %v5164_v40 = vld [vmem:[%s5934_s6 + $0x160] sm:$0xff]   ;;  %v5171_v3 = vld [vmem:[#allocation4 + $0x10] ss:$8 sps:$4 sm:$0xff]  }
 0x434   :  { %4678 = vmatprep.subr.bf16.mxu0 %v5114_v60  ;;  %v5165_v58 = vld [vmem:[%s5934_s6 + $0x168] sm:$0xff]   ;;  %v5174_v7 = vld [vmem:[%s5934_s6 + $0x190] sm:$0xff]  }
 0x435   :  { %v5173_v5 = vld [vmem:[%s5934_s6 + $0x188] sm:$0xff]   ;;  %v5183_v18 = vld [vmem:[#allocation4 + $0x11] ss:$8 sps:$4 sm:$0xff]  }
 0x436   :  { %v5185_v20 = vld [vmem:[%s5934_s6 + $0x1c8] sm:$0xff]   ;;  %v5186_v22 = vld [vmem:[%s5934_s6 + $0x1d0] sm:$0xff]  }
 0x437   :  { %4679 = vmatpush3.bf16.msra.mxu0 %v5114_v60  ;;  %v5166_v60 = vld [vmem:[%s5934_s6 + $0x170] sm:$0xff]   ;;  %v5197_v36 = vld [vmem:[%s5934_s6 + $0x208] sm:$0xff]  }
 0x438   :  { %4680 = vmatprep.subr.bf16.mxu0 %v5115_v62  ;;  %v5195_v33 = vld [vmem:[#allocation4 + $0x12] ss:$8 sps:$4 sm:$0xff]  }
 0x439   :  { %v5198_v39 = vld [vmem:[%s5934_s6 + $0x210] sm:$0xff]  }
 0x43b   :  { %4681 = vmatpush3.bf16.msra.mxu0 %v5115_v62  ;;  %v5167_v62 = vld [vmem:[%s5934_s6 + $0x178] sm:$0xff]  }
 0x43c   :  { %4682 = vmatprep.subr.bf16.mxu0 %v5116_v63 }
 0x43f   :  { %4683 = vmatpush3.bf16.msra.mxu0 %v5116_v63  ;;  %v5169_v63 = vld [vmem:[#allocation4 + $0x4a] ss:$8 sps:$4 sm:$0xff]  }
 0x440   :  { %4684 = vmatprep.subr.bf16.mxu0 %v5117_v0 }
 0x443   :  { %4685 = vmatpush3.bf16.msra.mxu0 %v5117_v0  ;;  %v5170_v0 = vld [vmem:[%s5934_s6 + $0x180] sm:$0xff]  }
 0x444   :  { %4686 = vmatprep.subr.bf16.mxu0 %v5118_v1 }
 0x447   :  { %4687 = vmatpush3.bf16.msra.mxu0 %v5118_v1  ;;  %v5172_v1 = vld [vmem:[#allocation4 + $0x20] ss:$8 sps:$4 sm:$0xff]  }
 0x448   :  { %4688 = vmatprep.subr.bf16.mxu0 %v5119_v2  ;;  %v3296_v6 = vpack.c.bf16 %v5172_v1, %v5171_v3 }
 0x44b   :  { %4689 = vmatpush3.bf16.msra.mxu0 %v5119_v2  ;;  %v5168_v2 = vld [vmem:[#allocation4 + $0x3a] ss:$8 sps:$4 sm:$0xff]  }
 0x44c   :  { %4694 = vmatprep.subr.bf16.mxu0 %v5122_v4 }
 0x44e   :  { %4691 = vmatmul.mubr.bf16.vlgmr.msra.gmra.mrb[4].mxu0 %v2441_v8  ;;  %v5175_v8 = vld [vmem:[%s5934_s6 + $0x198] sm:$0xff]  }
 0x44f   :  { %4695 = vmatpush3.bf16.msra.mxu0 %v5122_v4  ;;  %4710 = vmatprep.mubr.bf16.mxu0 %v2719_v10  ;;  %v3152_v4 = vpack.c.bf16 %v5169_v63, %v5168_v2  ;;  %v5177_v10 = vld [vmem:[%s5934_s6 + $0x1a8] sm:$0xff]  }
 0x450   :  { %4696 = vmatprep.subr.bf16.mxu0 %v5125_v9 }
 0x453   :  { %4697 = vmatpush3.bf16.msra.mxu0 %v5125_v9  ;;  %v5176_v9 = vld [vmem:[%s5934_s6 + $0x1a0] sm:$0xff]  }
 0x454   :  { %4698 = vmatprep.subr.bf16.mxu0 %v5126_v11 }
 0x457   :  { %4699 = vmatpush3.bf16.msra.mxu0 %v5126_v11  ;;  %v5178_v11 = vld [vmem:[%s5934_s6 + $0x1b0] sm:$0xff]  }
 0x458   :  { %4700 = vmatprep.subr.bf16.mxu0 %v5127_v12 }
 0x45b   :  { %4701 = vmatpush3.bf16.msra.mxu0 %v5127_v12  ;;  %v5179_v12 = vld [vmem:[%s5934_s6 + $0x1b8] sm:$0xff]  }
 0x45c   :  { %4702 = vmatprep.subr.bf16.mxu0 %v5128_v13 }
 0x45f   :  { %4703 = vmatpush3.bf16.msra.mxu0 %v5128_v13  ;;  %v5181_v13 = vld [vmem:[#allocation4 + $0x50] ss:$8 sps:$4 sm:$0xff]  }
 0x460   :  { %4704 = vmatprep.subr.bf16.mxu0 %v5129_v14 }
 0x463   :  { %4705 = vmatpush3.bf16.msra.mxu0 %v5129_v14  ;;  %v5182_v14 = vld [vmem:[%s5934_s6 + $0x1c0] sm:$0xff]  }
 0x464   :  { %4706 = vmatprep.subr.bf16.mxu0 %v5130_v16 }
 0x467   :  { %4707 = vmatpush3.bf16.msra.mxu0 %v5130_v16  ;;  %v5184_v16 = vld [vmem:[#allocation4 + $0x21] ss:$8 sps:$4 sm:$0xff]  }
 0x468   :  { %4708 = vmatprep.subr.bf16.mxu0 %v5131_v17  ;;  %v3440_v21 = vpack.c.bf16 %v5184_v16, %v5183_v18 }
 0x46b   :  { %4709 = vmatpush3.bf16.msra.mxu0 %v5131_v17  ;;  %v5180_v17 = vld [vmem:[#allocation4 + $0x40] ss:$8 sps:$4 sm:$0xff]  }
 0x46c   :  { %4714 = vmatprep.subr.bf16.mxu0 %v5134_v19 }
 0x46e   :  { %4711 = vmatmul.mubr.bf16.vlgmr.msra.gmra.mrb[4].mxu0 %v2720_v23  ;;  %v5187_v23 = vld [vmem:[%s5934_s6 + $0x1d8] sm:$0xff]  }
 0x46f   :  { %4715 = vmatpush3.bf16.msra.mxu0 %v5134_v19  ;;  %4730 = vmatprep.mubr.bf16.mxu0 %v2863_v25  ;;  %v3297_v19 = vpack.c.bf16 %v5181_v13, %v5180_v17  ;;  %v5189_v25 = vld [vmem:[%s5934_s6 + $0x1e8] sm:$0xff]  }
 0x470   :  { %4716 = vmatprep.subr.bf16.mxu0 %v5137_v24 }
 0x473   :  { %4717 = vmatpush3.bf16.msra.mxu0 %v5137_v24  ;;  %v5188_v24 = vld [vmem:[%s5934_s6 + $0x1e0] sm:$0xff]  }
 0x474   :  { %4718 = vmatprep.subr.bf16.mxu0 %v5138_v26 }
 0x477   :  { %4719 = vmatpush3.bf16.msra.mxu0 %v5138_v26  ;;  %v5190_v26 = vld [vmem:[%s5934_s6 + $0x1f0] sm:$0xff]  }
 0x478   :  { %4720 = vmatprep.subr.bf16.mxu0 %v5139_v27 }
 0x47b   :  { %4721 = vmatpush3.bf16.msra.mxu0 %v5139_v27  ;;  %v5191_v27 = vld [vmem:[%s5934_s6 + $0x1f8] sm:$0xff]  }
 0x47c   :  { %4722 = vmatprep.subr.bf16.mxu0 %v5140_v28 }
 0x47f   :  { %4723 = vmatpush3.bf16.msra.mxu0 %v5140_v28  ;;  %v5193_v28 = vld [vmem:[#allocation4 + $0x51] ss:$8 sps:$4 sm:$0xff]  }
 0x480   :  { %4724 = vmatprep.subr.bf16.mxu0 %v5141_v29 }
 0x483   :  { %4725 = vmatpush3.bf16.msra.mxu0 %v5141_v29  ;;  %v5194_v29 = vld [vmem:[%s5934_s6 + $0x200] sm:$0xff]  }
 0x484   :  { %4726 = vmatprep.subr.bf16.mxu0 %v5142_v30 }
 0x487   :  { %4727 = vmatpush3.bf16.msra.mxu0 %v5142_v30  ;;  %v5196_v30 = vld [vmem:[#allocation4 + $0x22] ss:$8 sps:$4 sm:$0xff]  }
 0x488   :  { %4728 = vmatprep.subr.bf16.mxu0 %v5143_v31  ;;  %v3584_v37 = vpack.c.bf16 %v5196_v30, %v5195_v33 }
 0x48b   :  { %4729 = vmatpush3.bf16.msra.mxu0 %v5143_v31  ;;  %v5192_v31 = vld [vmem:[#allocation4 + $0x41] ss:$8 sps:$4 sm:$0xff]  }
 0x48c   :  { %4734 = vmatprep.subr.bf16.mxu0 %v5146_v34 }
 0x48e   :  { %4731 = vmatmul.mubr.bf16.vlgmr.msra.gmra.mrb[4].mxu0 %v2864_v41  ;;  %v5199_v41 = vld [vmem:[%s5934_s6 + $0x218] sm:$0xff]  }
 0x48f   :  { %4735 = vmatpush3.bf16.msra.mxu0 %v5146_v34  ;;  %4750 = vmatprep.mubr.bf16.mxu0 %v3007_v43  ;;  %v3441_v34 = vpack.c.bf16 %v5193_v28, %v5192_v31  ;;  %v5201_v43 = vld [vmem:[%s5934_s6 + $0x228] sm:$0xff]  }
 0x490   :  { %4736 = vmatprep.subr.bf16.mxu0 %v5149_v42 }
 0x493   :  { %4737 = vmatpush3.bf16.msra.mxu0 %v5149_v42  ;;  %v5200_v42 = vld [vmem:[%s5934_s6 + $0x220] sm:$0xff]  }
 0x494   :  { %4738 = vmatprep.subr.bf16.mxu0 %v5150_v44 }
 0x497   :  { %4739 = vmatpush3.bf16.msra.mxu0 %v5150_v44  ;;  %v5202_v44 = vld [vmem:[%s5934_s6 + $0x230] sm:$0xff]  }
 0x498   :  { %4740 = vmatprep.subr.bf16.mxu0 %v5151_v15 }
 0x49b   :  { %4741 = vmatpush3.bf16.msra.mxu0 %v5151_v15  ;;  %v5203_v15 = vld [vmem:[%s5934_s6 + $0x238] sm:$0xff]   ;;  %s5246_s6 = smov [#allocation8]  }
 0x49c   :  { %4742 = vmatprep.subr.bf16.mxu0 %v5152_v45  ;;  %s3731_s28 = sshll.u32 %s5246_s6, 4  ;;  %s3732_s28 = int_to_ptr.vmem [resolvable:$true] %s3731_s28 }
 0x49d   :  { %s5218_s2 = scalar_lea.vmem %s3732_s28, 512  ;;  %p5223_p6 = scmp.lt.s32.totalorder %s3732_s28, %s3732_s28 }
 0x49e   :  { %p5219_p5 = scmp.ne.s32.totalorder %s3732_s28, %s5218_s2  ;;  %p5224_p7 = scmp.lt.s32.totalorder %s5218_s2, %s5218_s2 }
 0x49f   :  { %4743 = vmatpush3.bf16.msra.mxu0 %v5152_v45  ;;  %v5205_v45 = vld [vmem:[#allocation4 + $0x52] ss:$8 sps:$4 sm:$0xff]  }
 0x4a0   :  { %4744 = vmatprep.subr.bf16.mxu0 %v5153_v46  ;;  %p5225_p8 = por %p5224_p7, %p5223_p6 }
 0x4a2   :  { %p5226_p9 = pnand %p5225_p8, %p5219_p5 }
 0x4a3   :  { %4745 = vmatpush3.bf16.msra.mxu0 %v5153_v46  ;;  %v5204_v46 = vld [vmem:[#allocation4 + $0x42] ss:$8 sps:$4 sm:$0xff]  }
 0x4a4   :  { %4746 = vmatprep.subr.bf16.mxu0 %v5154_v47 }
 0x4a7   :  { %4747 = vmatpush3.bf16.msra.mxu0 %v5154_v47  ;;  %v3585_v47 = vpack.c.bf16 %v5205_v45, %v5204_v46 }
 0x4a8   :  { %4748 = vmatprep.subr.bf16.mxu0 %v5155_v48 }
 0x4ab   :  { %4749 = vmatpush3.bf16.msra.mxu0 %v5155_v48  ;;  %v3709_v48 = vstv %s4182_s5 }
 0x4ac   :  { %4754 = vmatprep.subr.bf16.mxu0 %v5158_v32 }
 0x4ae   :  { %4751 = vmatmul.mubr.bf16.vlgmr.msra.gmra.mrb[4].mxu0 %v3008_v53 }
 0x4af   :  { %4755 = vmatpush3.bf16.msra.mxu0 %v5158_v32  ;;  %4770 = vmatprep.mubr.bf16.mxu0 %v3151_v55 }
 0x4b0   :  { %4756 = vmatprep.subr.bf16.mxu0 %v5161_v54 }
 0x4b3   :  { %4757 = vmatpush3.bf16.msra.mxu0 %v5161_v54 }
 0x4b4   :  { %4758 = vmatprep.subr.bf16.mxu0 %v5162_v38 }
 0x4b7   :  { %4759 = vmatpush3.bf16.msra.mxu0 %v5162_v38 }
 0x4b8   :  { %4760 = vmatprep.subr.bf16.mxu0 %v5163_v57 }
 0x4bb   :  { %4761 = vmatpush3.bf16.msra.mxu0 %v5163_v57 }
 0x4bc   :  { %4762 = vmatprep.subr.bf16.mxu0 %v5164_v40 }
 0x4bf   :  { %4763 = vmatpush3.bf16.msra.mxu0 %v5164_v40 }
 0x4c0   :  { %4764 = vmatprep.subr.bf16.mxu0 %v5165_v58 }
 0x4c3   :  { %4765 = vmatpush3.bf16.msra.mxu0 %v5165_v58 }
 0x4c4   :  { %4766 = vmatprep.subr.bf16.mxu0 %v5166_v60 }
 0x4c7   :  { %4767 = vmatpush3.bf16.msra.mxu0 %v5166_v60 }
 0x4c8   :  { %4768 = vmatprep.subr.bf16.mxu0 %v5167_v62 }
 0x4cb   :  { %4769 = vmatpush3.bf16.msra.mxu0 %v5167_v62 }
 0x4cc   :  { %4774 = vmatprep.subr.bf16.mxu0 %v5170_v0 }
 0x4ce   :  { %4771 = vmatmul.mubr.bf16.vlgmr.msra.gmra.mrb[4].mxu0 %v3152_v4 }
 0x4cf   :  { %4775 = vmatpush3.bf16.msra.mxu0 %v5170_v0  ;;  %4790 = vmatprep.mubr.bf16.mxu0 %v3296_v6 }
 0x4d0   :  { %4776 = vmatprep.subr.bf16.mxu0 %v5173_v5 }
 0x4d3   :  { %4777 = vmatpush3.bf16.msra.mxu0 %v5173_v5 }
 0x4d4   :  { %4778 = vmatprep.subr.bf16.mxu0 %v5174_v7 }
 0x4d7   :  { %4779 = vmatpush3.bf16.msra.mxu0 %v5174_v7 }
 0x4d8   :  { %4780 = vmatprep.subr.bf16.mxu0 %v5175_v8 }
 0x4db   :  { %4781 = vmatpush3.bf16.msra.mxu0 %v5175_v8 }
 0x4dc   :  { %4782 = vmatprep.subr.bf16.mxu0 %v5176_v9 }
 0x4df   :  { %4783 = vmatpush3.bf16.msra.mxu0 %v5176_v9 }
 0x4e0   :  { %4784 = vmatprep.subr.bf16.mxu0 %v5177_v10 }
 0x4e3   :  { %4785 = vmatpush3.bf16.msra.mxu0 %v5177_v10 }
 0x4e4   :  { %4786 = vmatprep.subr.bf16.mxu0 %v5178_v11 }
 0x4e7   :  { %4787 = vmatpush3.bf16.msra.mxu0 %v5178_v11 }
 0x4e8   :  { %4788 = vmatprep.subr.bf16.mxu0 %v5179_v12 }
 0x4eb   :  { %4789 = vmatpush3.bf16.msra.mxu0 %v5179_v12 }
 0x4ec   :  { %4794 = vmatprep.subr.bf16.mxu0 %v5182_v14 }
 0x4ee   :  { %4791 = vmatmul.mubr.bf16.vlgmr.msra.gmra.mrb[4].mxu0 %v3297_v19 }
 0x4ef   :  { %4795 = vmatpush3.bf16.msra.mxu0 %v5182_v14  ;;  %4810 = vmatprep.mubr.bf16.mxu0 %v3440_v21 }
 0x4f0   :  { %4796 = vmatprep.subr.bf16.mxu0 %v5185_v20 }
 0x4f3   :  { %4797 = vmatpush3.bf16.msra.mxu0 %v5185_v20 }
 0x4f4   :  { %4798 = vmatprep.subr.bf16.mxu0 %v5186_v22 }
 0x4f7   :  { %4799 = vmatpush3.bf16.msra.mxu0 %v5186_v22 }
 0x4f8   :  { %4800 = vmatprep.subr.bf16.mxu0 %v5187_v23 }
 0x4fb   :  { %4801 = vmatpush3.bf16.msra.mxu0 %v5187_v23 }
 0x4fc   :  { %4802 = vmatprep.subr.bf16.mxu0 %v5188_v24 }
 0x4ff   :  { %4803 = vmatpush3.bf16.msra.mxu0 %v5188_v24 }
 0x500   :  { %4804 = vmatprep.subr.bf16.mxu0 %v5189_v25 }
 0x503   :  { %4805 = vmatpush3.bf16.msra.mxu0 %v5189_v25 }
 0x504   :  { %4806 = vmatprep.subr.bf16.mxu0 %v5190_v26 }
 0x507   :  { %4807 = vmatpush3.bf16.msra.mxu0 %v5190_v26 }
 0x508   :  { %4808 = vmatprep.subr.bf16.mxu0 %v5191_v27 }
 0x50b   :  { %4809 = vmatpush3.bf16.msra.mxu0 %v5191_v27 }
 0x50c   :  { %4814 = vmatprep.subr.bf16.mxu0 %v5194_v29 }
 0x50e   :  { %4811 = vmatmul.mubr.bf16.vlgmr.msra.gmra.mrb[4].mxu0 %v3441_v34 }
 0x50f   :  { %4815 = vmatpush3.bf16.msra.mxu0 %v5194_v29  ;;  %4830 = vmatprep.mubr.bf16.mxu0 %v3584_v37 }
 0x510   :  { %4816 = vmatprep.subr.bf16.mxu0 %v5197_v36 }
 0x513   :  { %4817 = vmatpush3.bf16.msra.mxu0 %v5197_v36 }
 0x514   :  { %4818 = vmatprep.subr.bf16.mxu0 %v5198_v39 }
 0x517   :  { %4819 = vmatpush3.bf16.msra.mxu0 %v5198_v39 }
 0x518   :  { %4820 = vmatprep.subr.bf16.mxu0 %v5199_v41 }
 0x51b   :  { %4821 = vmatpush3.bf16.msra.mxu0 %v5199_v41 }
 0x51c   :  { %4822 = vmatprep.subr.bf16.mxu0 %v5200_v42 }
 0x51f   :  { %4823 = vmatpush3.bf16.msra.mxu0 %v5200_v42 }
 0x520   :  { %4824 = vmatprep.subr.bf16.mxu0 %v5201_v43 }
 0x523   :  { %4825 = vmatpush3.bf16.msra.mxu0 %v5201_v43 }
 0x524   :  { %4826 = vmatprep.subr.bf16.mxu0 %v5202_v44 }
 0x527   :  { %4827 = vmatpush3.bf16.msra.mxu0 %v5202_v44 }
 0x528   :  { %4828 = vmatprep.subr.bf16.mxu0 %v5203_v15 }
 0x52b   :  { %4829 = vmatpush3.bf16.msra.mxu0 %v5203_v15 }
 0x52e   :  { %4831 = vmatmul.mubr.bf16.vlgmr.msra.gmra.mrb[4].mxu0 %v3585_v47 }
 0x601   :  { %v4832_v49 = vpop.f32.mrb[4].mxu0 }
 0x602   :  { %vm3707_vm0 = vcmp.ge.f32.partialorder %v4832_v49, 0.0  ;;  %v3712_v32 = vmul.f32 %v4832_v49, %v3709_v48  ;;  %v3685_v50 = vpop.f32.mrb[5].mxu0 }
 0x603   :  { %vm3705_vm1 = vcmp.ge.f32.partialorder %v3685_v50, 0.0  ;;  %v3710_v35 = vmul.f32 %v3709_v48, %v3685_v50  ;;  %v4833_v51 = vpop.f32.mrb[6].mxu0 }
 0x604   :  { %v3716_v53 = vsel %vm3707_vm0, %v4832_v49, %v3712_v32  ;;  %vm3708_vm2 = vcmp.ge.f32.partialorder %v4833_v51, 0.0  ;;  %v3713_v54 = vmul.f32 %v4833_v51, %v3709_v48  ;;  %v3688_v55 = vpop.f32.mrb[7].mxu0 }
 0x605   :  { %v3720_v38 = vadd.f32 %v3716_v53, %v5615_v52  ;;  %v3714_v57 = vsel %vm3705_vm1, %v3685_v50, %v3710_v35  ;;  %vm3706_vm3 = vcmp.ge.f32.partialorder %v3688_v55, 0.0  ;;  %v3711_v40 = vmul.f32 %v3709_v48, %v3688_v55 }
 0x606   :  { %v3718_v58 = vadd.f32 %v3714_v57, %v5621_v56  ;;  %v3717_v60 = vsel %vm3708_vm2, %v4833_v51, %v3713_v54 }
 0x607   :  { %3724 = vst.msk [vmem:[#allocation8 + $0x10] sm:$0xff] %vm1616_vm11, %v3720_v38  ;;  %v3721_v62 = vadd.f32 %v3717_v60, %v5627_v59  ;;  %v3715_v63 = vsel %vm3706_vm3, %v3688_v55, %v3711_v40 }
 0x608   :  { %3722 = vst.msk [vmem:[#allocation8] sm:$0xff] %vm1616_vm11, %v3718_v58  ;;  %v3719_v0 = vadd.f32 %v3715_v63, %v5634_v61 }
 0x609   :  { %3725 = vst.msk [vmem:[#allocation8 + $0x18] sm:$0xff] %vm1616_vm11, %v3721_v62 }
 0x60a   :  { %3723 = vst.msk [vmem:[#allocation8 + $0x8] sm:$0xff] %vm1616_vm11, %v3719_v0 }
 0x60b   :  { %5229 = shalt.err (!%p5226_p9)
}
 0x60c   :  { %s5230_s8 = scalar_lea.hbm %s5935_s7, 512 }
 0x60d   :  { %p5231_p10 = scmp.ne.s32.totalorder %s5935_s7, %s5230_s8  ;;  %p5234_p11 = scmp.lt.u32.totalorder %s5230_s8, %s5935_s7 }
 0x60f   :  { %p5236_p12 = pnand %p5234_p11, %p5231_p10 }
 0x611   :  { %5239 = shalt.err (!%p5236_p12)
}
 0x612   :  { %s5247_s4 = smov 128   ;;  %s5248_s11 = smov 8  }
 0x613   :  { %3737 = dma.vmem_to_hbm [thread:$0]  %s3732_s28, 512, %s5935_s7, [#allocation6], %s5247_s4, %s5247_s4, %s5248_s11  }
 0x614   :  { %5242 = dma.done.wait [#allocation6], 512  }
 0x615   :  { %5243 = vsyncadd [#allocation6], 4294966784 }
 0x616   :  { %3741 = vsyncpa [#allocation6], 1 }
 0x617   :  { %3742 = vsyncpa [#allocation7], 1 }

</bundles_post_ra>
